<compile_context>
chip_gen: v5e
topology: v5e:2x2
jax: 0.10.0
libtpu: 0.0.40
codegen_flags: <defaults>
</compile_context>

<pallas_src>
import jax
import jax.numpy as jnp
from jax import lax
from jax.experimental import pallas as pl
from jax.experimental.pallas import tpu as pltpu


def encoder_gru_kernel(x_ref,      # (T, H)   bf16 gathered embedding rows
                       h0_ref,     # (1, H)   f32  initial hidden state
                       wih_ref,    # (H, 3H)  bf16 W_ih^T, gate order [r, z, n]
                       whh_ref,    # (H, 3H)  bf16 W_hh^T, gate order [r, z, n]
                       ball_ref,   # (1, 3H)  f32  [b_ir+b_hr, b_iz+b_hz, b_in]
                       bhn_ref,    # (1, H)   f32  b_hn (stays inside r*(...))
                       out_ref,    # (T, H)   f32  hidden state per step
                       gi_scr):    # VMEM scratch (T, 3H) f32 precomputed input projections
    T = out_ref.shape[0]
    H = out_ref.shape[1]

    # Pre-pass: input-side projection for ALL time steps in one MXU matmul (M = T).
    gi_scr[...] = (
        jnp.dot(x_ref[...], wih_ref[...], preferred_element_type=jnp.float32)
        + ball_ref[...]
    )

    def step(t, h):
        # h: (1, H) f32 loop carry (stays in vregs).
        gi = gi_scr[pl.ds(t, 1), :]                                   # (1, 3H) f32
        gh = jnp.dot(h.astype(whh_ref.dtype), whh_ref[...],
                     preferred_element_type=jnp.float32)              # (1, 3H) f32

        i_r, i_z, i_n = gi[:, 0:H], gi[:, H:2 * H], gi[:, 2 * H:3 * H]
        h_r, h_z, h_n = gh[:, 0:H], gh[:, H:2 * H], gh[:, 2 * H:3 * H]

        # PyTorch GRU cell semantics (elementwise math kept in f32).
        r = jax.nn.sigmoid(i_r + h_r)
        z = jax.nn.sigmoid(i_z + h_z)
        n = jnp.tanh(i_n + r * (h_n + bhn_ref[...]))
        h_new = (1.0 - z) * n + z * h

        out_ref[pl.ds(t, 1), :] = h_new        # row write into the VMEM-resident block
        return h_new

    lax.fori_loop(0, T, step, h0_ref[...], unroll=True)


def prepare_params(emb, w_ih, w_hh, b_ih, b_hh, weight_dtype=jnp.bfloat16):
    """One-time parameter prep: transpose weights, quantize to bf16, pre-combine biases."""
    H = emb.shape[1]
    emb_q = emb.astype(weight_dtype)                                  # (V, H)
    wih_t = jnp.asarray(w_ih.T, dtype=weight_dtype)                   # (H, 3H)
    whh_t = jnp.asarray(w_hh.T, dtype=weight_dtype)                   # (H, 3H)
    b_all = jnp.concatenate([b_ih[:2 * H] + b_hh[:2 * H], b_ih[2 * H:]]
                            ).reshape(1, 3 * H).astype(jnp.float32)   # (1, 3H)
    b_hn = b_hh[2 * H:].reshape(1, H).astype(jnp.float32)             # (1, H)
    return emb_q, wih_t, whh_t, b_all, b_hn


def encoder_gru_sequence(tokens, hidden, prepared):
    """Run the GRU over a token sequence in ONE pallas_call (single grid step).

    tokens : (T,) int32 token ids
    hidden : (1, 1, H) f32 initial hidden state
    Returns (outputs, hidden) with shapes (T, 1, H) and (1, 1, H) — what
    nn.GRU(seq_len=T, batch=1) returns.
    """
    emb, wih_t, whh_t, b_all, b_hn = prepared
    V, H = emb.shape
    T = int(tokens.shape[0])
    h0 = hidden.reshape(1, H).astype(jnp.float32)

    # Embedding gather hoisted to XLA (data-dependent row gather); bf16 rows, (T, H).
    x = jnp.take(emb, tokens.astype(jnp.int32), axis=0)

    outs = pl.pallas_call(
        encoder_gru_kernel,
        out_shape=jax.ShapeDtypeStruct((T, H), jnp.float32),
        grid_spec=pltpu.PrefetchScalarGridSpec(
            num_scalar_prefetch=0,
            grid=(1,),                      # single grid step; recurrence via fori_loop
            in_specs=[
                pl.BlockSpec((T, H), lambda i: (0, 0)),        # gathered embeddings
                pl.BlockSpec((1, H), lambda i: (0, 0)),        # h0 (initial carry)
                pl.BlockSpec((H, 3 * H), lambda i: (0, 0)),    # W_ih^T
                pl.BlockSpec((H, 3 * H), lambda i: (0, 0)),    # W_hh^T
                pl.BlockSpec((1, 3 * H), lambda i: (0, 0)),    # combined biases
                pl.BlockSpec((1, H), lambda i: (0, 0)),        # b_hn
            ],
            out_specs=pl.BlockSpec((T, H), lambda i: (0, 0)),  # one (T,H) writeback
            scratch_shapes=[pltpu.VMEM((T, 3 * H), jnp.float32)],
        ),
        compiler_params=pltpu.CompilerParams(
            dimension_semantics=("arbitrary",),
            vmem_limit_bytes=8 * 1024 * 1024,   # footprint ~1 MB; safe on v7x's 64 MiB
        ),
    )(x, h0, wih_t, whh_t, b_all, b_hn)

    output = outs.reshape(T, 1, H)
    hidden_out = outs[T - 1:T].reshape(1, 1, H)
    return output, hidden_out


def encoder_gru_forward(tok, hidden, prepared):
    """Exact EncoderGRU.forward semantics: one token id, one GRU step.
    Returns (output, hidden), each (1, 1, H)."""
    out, hid = encoder_gru_sequence(tok.reshape(1), hidden, prepared)
    return out, hid


def _reference_sequence(tokens, hidden, prepared):
    """Pure-JAX reference reproducing nn.Embedding + nn.GRU (1 layer) step-by-step,
    using the same prepared (bf16) parameters as the kernel."""
    emb, wih_t, whh_t, b_all, b_hn = prepared
    H = emb.shape[1]
    h = hidden.reshape(1, H).astype(jnp.float32)
    outs = []
    for t in range(tokens.shape[0]):
        x = emb[tokens[t]].reshape(1, H)
        gi = jnp.dot(x, wih_t, preferred_element_type=jnp.float32) + b_all
        gh = jnp.dot(h.astype(whh_t.dtype), whh_t, preferred_element_type=jnp.float32)
        i_r, i_z, i_n = gi[:, :H], gi[:, H:2 * H], gi[:, 2 * H:]
        h_r, h_z, h_n = gh[:, :H], gh[:, H:2 * H], gh[:, 2 * H:]
        r = jax.nn.sigmoid(i_r + h_r)
        z = jax.nn.sigmoid(i_z + h_z)
        n = jnp.tanh(i_n + r * (h_n + b_hn))
        h = (1.0 - z) * n + z * h
        outs.append(h)
    return jnp.stack(outs, 0), h.reshape(1, 1, H)


def init_params(key, input_size, hidden_size):
    """Deterministic synthetic parameters in PyTorch layout (nn.Embedding / nn.GRU)."""
    k_emb, k_wih, k_whh, k_bih, k_bhh = jax.random.split(key, 5)
    bound = 1.0 / jnp.sqrt(hidden_size)
    emb = jax.random.normal(k_emb, (input_size, hidden_size), jnp.float32)
    w_ih = jax.random.uniform(k_wih, (3 * hidden_size, hidden_size), jnp.float32, -bound, bound)
    w_hh = jax.random.uniform(k_whh, (3 * hidden_size, hidden_size), jnp.float32, -bound, bound)
    b_ih = jax.random.uniform(k_bih, (3 * hidden_size,), jnp.float32, -bound, bound)
    b_hh = jax.random.uniform(k_bhh, (3 * hidden_size,), jnp.float32, -bound, bound)
    return emb, w_ih, w_hh, b_ih, b_hh


if __name__ == "__main__":
    input_size = 1024      # vocab size (small but realistic)
    hidden_size = 256      # module default; multiple of 128 keeps lanes dense
    seq_len = 8

    key = jax.random.PRNGKey(0)
    k_params, k_tok = jax.random.split(key, 2)

    raw_params = init_params(k_params, input_size, hidden_size)
    prepared = prepare_params(*raw_params)           # one-time transpose / bf16 / bias fold

    tokens = jax.random.randint(k_tok, (seq_len,), 0, input_size, jnp.int32)
    hidden0 = jnp.zeros((1, 1, hidden_size), jnp.float32)    # initHidden()

    # 1) Single-step call: exact EncoderGRU.forward semantics.
    out1, hid1 = encoder_gru_forward(tokens[:1], hidden0, prepared)
    out1, hid1 = jax.block_until_ready((out1, hid1))

    # 2) Sequence-fused call: whole encode loop in one pallas_call / one grid step.
    out_seq, hid_seq = encoder_gru_sequence(tokens, hidden0, prepared)
    out_seq, hid_seq = jax.block_until_ready((out_seq, hid_seq))

    ref_out1, ref_hid1 = _reference_sequence(tokens[:1], hidden0, prepared)
    ref_out, ref_hid = _reference_sequence(tokens, hidden0, prepared)

    assert out1.shape == (1, 1, hidden_size)
    assert hid1.shape == (1, 1, hidden_size)
    assert out_seq.shape == (seq_len, 1, hidden_size)
    assert hid_seq.shape == (1, 1, hidden_size)
    assert jnp.allclose(out1, ref_out1, atol=1e-4, rtol=1e-4)
    assert jnp.allclose(hid1, ref_hid1, atol=1e-4, rtol=1e-4)
    assert jnp.allclose(out_seq, ref_out, atol=1e-4, rtol=1e-4)
    assert jnp.allclose(hid_seq, ref_hid, atol=1e-4, rtol=1e-4)

    print("KERNEL_OK")
</pallas_src>

<mosaic_0001>
module attributes {stable_mosaic.version = 11 : i64} {
  func.func @encoder_gru_kernel(%arg0: i32, %arg1: memref<1x256xbf16, #tpu.memory_space<vmem>>, %arg2: memref<1x256xf32, #tpu.memory_space<vmem>>, %arg3: memref<256x768xbf16, #tpu.memory_space<vmem>>, %arg4: memref<256x768xbf16, #tpu.memory_space<vmem>>, %arg5: memref<1x768xf32, #tpu.memory_space<vmem>>, %arg6: memref<1x256xf32, #tpu.memory_space<vmem>>, %arg7: memref<1x256xf32, #tpu.memory_space<vmem>>, %arg8: memref<1x768xf32, #tpu.memory_space<vmem>>) attributes {dimension_semantics = [#tpu.dimension_semantics<arbitrary>], iteration_bounds = array<i64: 1>, scalar_prefetch = 0 : i64, scratch_operands = 1 : i64, tpu.core_type = #tpu.core_type<tc>, window_params = [{pipeline_mode = #tpu.pipeline_mode<synchronous>, transform_indices = @transform_0, window_bounds = array<i64: 1, 256>}, {pipeline_mode = #tpu.pipeline_mode<synchronous>, transform_indices = @transform_1, window_bounds = array<i64: 1, 256>}, {pipeline_mode = #tpu.pipeline_mode<synchronous>, transform_indices = @transform_2, window_bounds = array<i64: 256, 768>}, {pipeline_mode = #tpu.pipeline_mode<synchronous>, transform_indices = @transform_3, window_bounds = array<i64: 256, 768>}, {pipeline_mode = #tpu.pipeline_mode<synchronous>, transform_indices = @transform_4, window_bounds = array<i64: 1, 768>}, {pipeline_mode = #tpu.pipeline_mode<synchronous>, transform_indices = @transform_5, window_bounds = array<i64: 1, 256>}, {pipeline_mode = #tpu.pipeline_mode<synchronous>, transform_indices = @transform_6, window_bounds = array<i64: 1, 256>}]} {
    %c0 = arith.constant 0 : index
    %c0_0 = arith.constant 0 : index
    %0 = vector.load %arg1[%c0, %c0_0] : memref<1x256xbf16, #tpu.memory_space<vmem>>, vector<1x256xbf16>
    %c0_1 = arith.constant 0 : index
    %c0_2 = arith.constant 0 : index
    %1 = vector.load %arg3[%c0_1, %c0_2] : memref<256x768xbf16, #tpu.memory_space<vmem>>, vector<256x768xbf16>
    %cst = arith.constant dense<0.000000e+00> : vector<1x768xf32>
    %2 = tpu.matmul %0, %1, %cst {dimension_numbers = #tpu.dot_dimension_numbers<[1], [0], [0], [1], [0, 0, 1, 1], [], []>} : vector<1x256xbf16>, vector<256x768xbf16>, vector<1x768xf32> -> vector<1x768xf32>
    %c0_3 = arith.constant 0 : index
    %c0_4 = arith.constant 0 : index
    %3 = vector.load %arg5[%c0_3, %c0_4] : memref<1x768xf32, #tpu.memory_space<vmem>>, vector<1x768xf32>
    %4 = arith.addf %2, %3 : vector<1x768xf32>
    %c0_5 = arith.constant 0 : index
    %c0_6 = arith.constant 0 : index
    %5 = vector.load %arg8[%c0_5, %c0_6] : memref<1x768xf32, #tpu.memory_space<vmem>>, vector<1x768xf32>
    tpu.vector_store %arg8[%c0_5, %c0_6], %4 {strides = array<i32>} : memref<1x768xf32, #tpu.memory_space<vmem>>, vector<1x768xf32>,
    %c0_7 = arith.constant 0 : index
    %c0_8 = arith.constant 0 : index
    %6 = vector.load %arg2[%c0_7, %c0_8] : memref<1x256xf32, #tpu.memory_space<vmem>>, vector<1x256xf32>
    %c0_i32 = arith.constant 0 : i32
    %7 = arith.index_cast %c0_i32 : i32 to index
    %c0_9 = arith.constant 0 : index
    %8 = vector.load %arg8[%7, %c0_9] : memref<1x768xf32, #tpu.memory_space<vmem>>, vector<1x768xf32>
    %9 = arith.truncf %6 : vector<1x256xf32> to vector<1x256xbf16>
    %c0_10 = arith.constant 0 : index
    %c0_11 = arith.constant 0 : index
    %10 = vector.load %arg4[%c0_10, %c0_11] : memref<256x768xbf16, #tpu.memory_space<vmem>>, vector<256x768xbf16>
    %cst_12 = arith.constant dense<0.000000e+00> : vector<1x768xf32>
    %11 = tpu.matmul %9, %10, %cst_12 {dimension_numbers = #tpu.dot_dimension_numbers<[1], [0], [0], [1], [0, 0, 1, 1], [], []>} : vector<1x256xbf16>, vector<256x768xbf16>, vector<1x768xf32> -> vector<1x768xf32>
    %12 = vector.extract_strided_slice %8 {offsets = [0, 0], sizes = [1, 256], strides = [1, 1]} : vector<1x768xf32> to vector<1x256xf32>
    %13 = vector.extract_strided_slice %8 {offsets = [0, 256], sizes = [1, 256], strides = [1, 1]} : vector<1x768xf32> to vector<1x256xf32>
    %14 = vector.extract_strided_slice %8 {offsets = [0, 512], sizes = [1, 256], strides = [1, 1]} : vector<1x768xf32> to vector<1x256xf32>
    %15 = vector.extract_strided_slice %11 {offsets = [0, 0], sizes = [1, 256], strides = [1, 1]} : vector<1x768xf32> to vector<1x256xf32>
    %16 = vector.extract_strided_slice %11 {offsets = [0, 256], sizes = [1, 256], strides = [1, 1]} : vector<1x768xf32> to vector<1x256xf32>
    %17 = vector.extract_strided_slice %11 {offsets = [0, 512], sizes = [1, 256], strides = [1, 1]} : vector<1x768xf32> to vector<1x256xf32>
    %18 = arith.addf %12, %15 : vector<1x256xf32>
    %19 = arith.negf %18 : vector<1x256xf32>
    %20 = math.exp %19 : vector<1x256xf32>
    %cst_13 = arith.constant 1.000000e+00 : f32
    %21 = vector.broadcast %cst_13 : f32 to vector<1x256xf32>
    %22 = arith.addf %21, %20 : vector<1x256xf32>
    %23 = arith.divf %21, %22 : vector<1x256xf32>
    %24 = arith.addf %13, %16 : vector<1x256xf32>
    %25 = arith.negf %24 : vector<1x256xf32>
    %26 = math.exp %25 : vector<1x256xf32>
    %cst_14 = arith.constant 1.000000e+00 : f32
    %27 = vector.broadcast %cst_14 : f32 to vector<1x256xf32>
    %28 = arith.addf %27, %26 : vector<1x256xf32>
    %29 = arith.divf %27, %28 : vector<1x256xf32>
    %c0_15 = arith.constant 0 : index
    %c0_16 = arith.constant 0 : index
    %30 = vector.load %arg6[%c0_15, %c0_16] : memref<1x256xf32, #tpu.memory_space<vmem>>, vector<1x256xf32>
    %31 = arith.addf %17, %30 : vector<1x256xf32>
    %32 = arith.mulf %23, %31 : vector<1x256xf32>
    %33 = arith.addf %14, %32 : vector<1x256xf32>
    %34 = math.tanh %33 : vector<1x256xf32>
    %cst_17 = arith.constant 1.000000e+00 : f32
    %35 = vector.broadcast %cst_17 : f32 to vector<1x256xf32>
    %36 = arith.subf %35, %29 : vector<1x256xf32>
    %37 = arith.mulf %36, %34 : vector<1x256xf32>
    %38 = arith.mulf %29, %6 : vector<1x256xf32>
    %39 = arith.addf %37, %38 : vector<1x256xf32>
    %40 = arith.index_cast %c0_i32 : i32 to index
    %c0_18 = arith.constant 0 : index
    %41 = vector.load %arg7[%40, %c0_18] : memref<1x256xf32, #tpu.memory_space<vmem>>, vector<1x256xf32>
    tpu.vector_store %arg7[%40, %c0_18], %39 {strides = array<i32>} : memref<1x256xf32, #tpu.memory_space<vmem>>, vector<1x256xf32>,
    %c1_i32 = arith.constant 1 : i32
    return
  }
  func.func @transform_0(%arg0: i32) -> (i32, i32) {
    %c0_i32 = arith.constant 0 : i32
    %c0_i32_0 = arith.constant 0 : i32
    %c0_i32_1 = arith.constant 0 : i32
    return %c0_i32, %c0_i32_0 : i32, i32
  }
  func.func @transform_1(%arg0: i32) -> (i32, i32) {
    %c0_i32 = arith.constant 0 : i32
    %c0_i32_0 = arith.constant 0 : i32
    %c0_i32_1 = arith.constant 0 : i32
    return %c0_i32, %c0_i32_0 : i32, i32
  }
  func.func @transform_2(%arg0: i32) -> (i32, i32) {
    %c0_i32 = arith.constant 0 : i32
    %c0_i32_0 = arith.constant 0 : i32
    %c0_i32_1 = arith.constant 0 : i32
    return %c0_i32, %c0_i32_0 : i32, i32
  }
  func.func @transform_3(%arg0: i32) -> (i32, i32) {
    %c0_i32 = arith.constant 0 : i32
    %c0_i32_0 = arith.constant 0 : i32
    %c0_i32_1 = arith.constant 0 : i32
    return %c0_i32, %c0_i32_0 : i32, i32
  }
  func.func @transform_4(%arg0: i32) -> (i32, i32) {
    %c0_i32 = arith.constant 0 : i32
    %c0_i32_0 = arith.constant 0 : i32
    %c0_i32_1 = arith.constant 0 : i32
    return %c0_i32, %c0_i32_0 : i32, i32
  }
  func.func @transform_5(%arg0: i32) -> (i32, i32) {
    %c0_i32 = arith.constant 0 : i32
    %c0_i32_0 = arith.constant 0 : i32
    %c0_i32_1 = arith.constant 0 : i32
    return %c0_i32, %c0_i32_0 : i32, i32
  }
  func.func @transform_6(%arg0: i32) -> (i32, i32) {
    %c0_i32 = arith.constant 0 : i32
    %c0_i32_0 = arith.constant 0 : i32
    %c0_i32_1 = arith.constant 0 : i32
    return %c0_i32, %c0_i32_0 : i32, i32
  }
}

</mosaic_0001>

<bundles_post_ra>
// kernel: tpu_custom_call.1
= control target key start
LH: loop header
LB: loop body
LE: loop exit
PB: predicated region body
PF: predicated region fallthrough
CT: control target
= control target key end

     0   :  { %11 = vsyncpa [#allocation4], 0  ;;  %s2964_s0 = inlined_call_operand.hbm [shape: bf16[1,256], index: 0, kind: input, shape index: {}]   ;;  %s2965_s1 = inlined_call_operand.hbm [shape: f32[1,256], index: 1, kind: input, shape index: {}]   ;;  %s2966_s2 = inlined_call_operand.hbm [shape: bf16[256,768], index: 2, kind: input, shape index: {}]   ;;  %s2967_s3 = inlined_call_operand.hbm [shape: bf16[256,768], index: 3, kind: input, shape index: {}]   ;;  %s2968_s4 = inlined_call_operand.hbm [shape: f32[1,768], index: 4, kind: input, shape index: {}]   ;;  %s2969_s5 = inlined_call_operand.vmem [shape: f32[1,256], index: 5, kind: input, shape index: {}]   ;;  %s2970_s6 = inlined_call_operand.hbm [shape: f32[1,256], index: 6, kind: output, shape index: {}]  }
   0x1   :  { %12 = vsyncpa [#allocation7], 0 }
   0x2   :  { %13 = vsyncpa [#allocation10], 0  ;;  %s31_s23 = sshll.u32 %s2965_s1, 4  ;;  %s32_s23 = int_to_ptr.hbm [resolvable:$true] %s31_s23 }
   0x3   :  { %14 = vsyncpa [#allocation5], 0  ;;  %s2846_s24 = smov [#allocation6]   ;;  %s54_s28 = sshll.u32 %s2967_s3, 4  ;;  %s55_s28 = int_to_ptr.hbm [resolvable:$true] %s54_s28 }
   0x4   :  { %s33_s25 = sshll.u32 %s2846_s24, 4  ;;  %s2847_s29 = smov [#allocation9]   ;;  %s34_s25 = int_to_ptr.vmem [resolvable:$true] %s33_s25 }
   0x5   :  { %36 = dma.hbm_to_vmem [thread:$0]  %s32_s23, 32, %s34_s25, [#allocation7]  }
   0x6   :  { %s56_s30 = sshll.u32 %s2847_s29, 4  ;;  %s20_s9 = sshll.u32 %s2964_s0, 4  ;;  %s57_s30 = int_to_ptr.vmem [resolvable:$true] %s56_s30  ;;  %s21_s9 = int_to_ptr.hbm [resolvable:$true] %s20_s9 }
   0x7   :  { %s2848_s1 = smov 384   ;;  %s2849_s10 = smov 24  }
   0x8   :  { %62 = dma.hbm_to_vmem [thread:$0]  %s55_s28, 12288, %s57_s30, [#allocation10], %s2848_s1, %s2848_s1, %s2849_s10  }
   0x9   :  { %s41_s13 = sshll.u32 %s2966_s2, 4  ;;  %s2850_s14 = smov [#allocation3]   ;;  %s42_s13 = int_to_ptr.hbm [resolvable:$true] %s41_s13 }
   0xa   :  { %s22_s15 = sshll.u32 %s2850_s14, 4  ;;  %s2851_s3 = smov [#allocation8]   ;;  %s23_s15 = int_to_ptr.vmem [resolvable:$true] %s22_s15 }
   0xb   :  { %25 = dma.hbm_to_vmem [thread:$0]  %s21_s9, 32, %s23_s15, [#allocation4]  }
   0xc   :  { %s43_s16 = sshll.u32 %s2851_s3, 4  ;;  %s68_s0 = sshll.u32 %s2968_s4, 4  ;;  %s44_s16 = int_to_ptr.vmem [resolvable:$true] %s43_s16  ;;  %s69_s0 = int_to_ptr.hbm [resolvable:$true] %s68_s0 }
   0xd   :  { %49 = dma.hbm_to_vmem [thread:$0]  %s42_s13, 12288, %s44_s16, [#allocation7], %s2848_s1, %s2848_s1, %s2849_s10  }
   0xe   :  { %s2852_s19 = smov [#allocation11]  }
   0xf   :  { %s70_s20 = sshll.u32 %s2852_s19, 4  ;;  %s71_s20 = int_to_ptr.vmem [resolvable:$true] %s70_s20 }
  0x10   :  { %73 = dma.hbm_to_vmem [thread:$0]  %s69_s0, 96, %s71_s20, [#allocation10]  }
  0x11   :  { %2838 = dma.done.wait [#allocation4], 32  }
  0x12   :  { %2839 = vsyncadd [#allocation4], 4294967264 }
  0x13   :  { %2840 = dma.done.wait [#allocation7], 12320  }
  0x14   :  { %2841 = vsyncadd [#allocation7], 4294954976 }
  0x15   :  { %2842 = dma.done.wait [#allocation10], 12384  }
  0x16   :  { %2843 = vsyncadd [#allocation10], 4294954912  ;;  %v1884_v0 = vld [vmem:[#allocation8 + $0x150] sm:$0xf]  ;;  %v2529_v1 = vld [vmem:[#allocation8 + $0x164] sm:$0xf0] }
  0x17   :  { %v2076_v2 = vld [vmem:[#allocation8 + $0x2d0] sm:$0xf]  ;;  %v1885_v3 = vor.u32 %v2529_v1, %v1884_v0  ;;  %v2577_v4 = vld [vmem:[#allocation8 + $0x2e4] sm:$0xf0]  ;;  %v2526_v5 = vld [vmem:[#allocation8 + $0x154] sm:$0xf] }
  0x18   :  { %v1886_v6 = vld [vmem:[#allocation8 + $0x168] sm:$0xf0]  ;;  %v2077_v7 = vor.u32 %v2577_v4, %v2076_v2  ;;  %v2574_v9 = vld [vmem:[#allocation8 + $0x2d4] sm:$0xf]  ;;  %v1860_v11 = vld [vmem:[#allocation8 + $0x120] sm:$0xf] }
  0x19   :  { %v1889_v8 = vor.u32 %v2526_v5, %v1886_v6  ;;  %v2078_v10 = vld [vmem:[#allocation8 + $0x2e8] sm:$0xf0]  ;;  %693 = vmatpush.bf16.msra.mxu0 %v1885_v3  ;;  %v2523_v13 = vld [vmem:[#allocation8 + $0x134] sm:$0xf0]  ;;  %v2052_v14 = vld [vmem:[#allocation8 + $0x2a0] sm:$0xf] }
  0x1a   :  { %v2081_v12 = vor.u32 %v2574_v9, %v2078_v10  ;;  %v2571_v15 = vld [vmem:[#allocation8 + $0x2b4] sm:$0xf0]  ;;  %706 = vmatpush.bf16.msra.mxu1 %v2077_v7  ;;  %v1861_v16 = vor.u32 %v2523_v13, %v1860_v11  ;;  %v2520_v18 = vld [vmem:[#allocation8 + $0x124] sm:$0xf]  ;;  %v1862_v19 = vld [vmem:[#allocation8 + $0x138] sm:$0xf0] }
  0x1b   :  { %719 = vmatpush.bf16.msra.mxu2 %v1889_v8  ;;  %v2053_v17 = vor.u32 %v2571_v15, %v2052_v14  ;;  %v2568_v20 = vld [vmem:[#allocation8 + $0x2a4] sm:$0xf]  ;;  %v1865_v21 = vor.u32 %v2520_v18, %v1862_v19  ;;  %v2054_v22 = vld [vmem:[#allocation8 + $0x2b8] sm:$0xf0]  ;;  %v1836_v23 = vld [vmem:[#allocation8 + $0xf0] sm:$0xf] }
  0x1c   :  { %732 = vmatpush.bf16.msra.mxu3 %v2081_v12  ;;  %v2517_v24 = vld [vmem:[#allocation8 + $0x104] sm:$0xf0]  ;;  %v2057_v25 = vor.u32 %v2568_v20, %v2054_v22  ;;  %v2028_v26 = vld [vmem:[#allocation8 + $0x270] sm:$0xf]  ;;  %v2514_v28 = vld [vmem:[#allocation8 + $0xf4] sm:$0xf] }
  0x1d   :  { %v2565_v27 = vld [vmem:[#allocation8 + $0x284] sm:$0xf0]  ;;  %694 = vmatpush.bf16.msra.mxu0 %v1861_v16  ;;  %v1837_v29 = vor.u32 %v2517_v24, %v1836_v23  ;;  %v1838_v30 = vld [vmem:[#allocation8 + $0x108] sm:$0xf0]  ;;  %v2562_v31 = vld [vmem:[#allocation8 + $0x274] sm:$0xf] }
  0x1e   :  { %v2030_v32 = vld [vmem:[#allocation8 + $0x288] sm:$0xf0]  ;;  %707 = vmatpush.bf16.msra.mxu1 %v2053_v17  ;;  %v2029_v33 = vor.u32 %v2565_v27, %v2028_v26  ;;  %v1841_v34 = vor.u32 %v2514_v28, %v1838_v30  ;;  %v1812_v35 = vld [vmem:[#allocation8 + $0xc0] sm:$0xf]  ;;  %v2511_v36 = vld [vmem:[#allocation8 + $0xd4] sm:$0xf0] }
  0x1f   :  { %720 = vmatpush.bf16.msra.mxu2 %v1865_v21  ;;  %v2004_v37 = vld [vmem:[#allocation8 + $0x240] sm:$0xf]  ;;  %v2033_v38 = vor.u32 %v2562_v31, %v2030_v32  ;;  %v2559_v39 = vld [vmem:[#allocation8 + $0x254] sm:$0xf0]  ;;  %v2508_v40 = vld [vmem:[#allocation8 + $0xc4] sm:$0xf]  ;;  %v1813_v44 = vor.u32 %v2511_v36, %v1812_v35 }
  0x20   :  { %733 = vmatpush.bf16.msra.mxu3 %v2057_v25  ;;  %v1814_v41 = vld [vmem:[#allocation8 + $0xd8] sm:$0xf0]  ;;  %v2556_v42 = vld [vmem:[#allocation8 + $0x244] sm:$0xf]  ;;  %v2005_v45 = vor.u32 %v2559_v39, %v2004_v37  ;;  %v1788_v47 = vld [vmem:[#allocation8 + $0x90] sm:$0xf] }
  0x21   :  { %v2006_v43 = vld [vmem:[#allocation8 + $0x258] sm:$0xf0]  ;;  %695 = vmatpush.bf16.msra.mxu0 %v1837_v29  ;;  %v1817_v46 = vor.u32 %v2508_v40, %v1814_v41  ;;  %v2505_v48 = vld [vmem:[#allocation8 + $0xa4] sm:$0xf0]  ;;  %v1980_v49 = vld [vmem:[#allocation8 + $0x210] sm:$0xf] }
  0x22   :  { %708 = vmatpush.bf16.msra.mxu1 %v2029_v33  ;;  %v2009_v50 = vor.u32 %v2556_v42, %v2006_v43  ;;  %v2553_v51 = vld [vmem:[#allocation8 + $0x224] sm:$0xf0]  ;;  %v2502_v52 = vld [vmem:[#allocation8 + $0x94] sm:$0xf]  ;;  %v1790_v53 = vld [vmem:[#allocation8 + $0xa8] sm:$0xf0]  ;;  %v1789_v56 = vor.u32 %v2505_v48, %v1788_v47 }
  0x23   :  { %721 = vmatpush.bf16.msra.mxu2 %v1841_v34  ;;  %v2550_v54 = vld [vmem:[#allocation8 + $0x214] sm:$0xf]  ;;  %v1982_v55 = vld [vmem:[#allocation8 + $0x228] sm:$0xf0]  ;;  %v1981_v57 = vor.u32 %v2553_v51, %v1980_v49  ;;  %v1793_v58 = vor.u32 %v2502_v52, %v1790_v53  ;;  %v1764_v59 = vld [vmem:[#allocation8 + $0x60] sm:$0xf] }
  0x24   :  { %734 = vmatpush.bf16.msra.mxu3 %v2033_v38  ;;  %v2499_v60 = vld [vmem:[#allocation8 + $0x74] sm:$0xf0]  ;;  %v1956_v61 = vld [vmem:[#allocation8 + $0x1e0] sm:$0xf]  ;;  %v1985_v62 = vor.u32 %v2550_v54, %v1982_v55  ;;  %v2496_v0 = vld [vmem:[#allocation8 + $0x64] sm:$0xf] }
  0x25   :  { %696 = vmatpush.bf16.msra.mxu0 %v1813_v44  ;;  %v2547_v63 = vld [vmem:[#allocation8 + $0x1f4] sm:$0xf0]  ;;  %v1766_v1 = vld [vmem:[#allocation8 + $0x78] sm:$0xf0]  ;;  %v2544_v2 = vld [vmem:[#allocation8 + $0x1e4] sm:$0xf]  ;;  %v1765_v4 = vor.u32 %v2499_v60, %v1764_v59 }
  0x26   :  { %709 = vmatpush.bf16.msra.mxu1 %v2005_v45  ;;  %v1958_v3 = vld [vmem:[#allocation8 + $0x1f8] sm:$0xf0]  ;;  %v1957_v5 = vor.u32 %v2547_v63, %v1956_v61  ;;  %v1769_v6 = vor.u32 %v2496_v0, %v1766_v1  ;;  %v1740_v7 = vld [vmem:[#allocation8 + $0x30] sm:$0xf]  ;;  %v2493_v8 = vld [vmem:[#allocation8 + $0x44] sm:$0xf0] }
  0x27   :  { %722 = vmatpush.bf16.msra.mxu2 %v1817_v46  ;;  %v1932_v9 = vld [vmem:[#allocation8 + $0x1b0] sm:$0xf]  ;;  %v1961_v10 = vor.u32 %v2544_v2, %v1958_v3  ;;  %v2541_v11 = vld [vmem:[#allocation8 + $0x1c4] sm:$0xf0]  ;;  %v2490_v12 = vld [vmem:[#allocation8 + $0x34] sm:$0xf]  ;;  %v1741_v16 = vor.u32 %v2493_v8, %v1740_v7 }
  0x28   :  { %735 = vmatpush.bf16.msra.mxu3 %v2009_v50  ;;  %v1742_v13 = vld [vmem:[#allocation8 + $0x48] sm:$0xf0]  ;;  %v2538_v14 = vld [vmem:[#allocation8 + $0x1b4] sm:$0xf]  ;;  %v1716_v17 = vld [vmem:[#allocation8] sm:$0xf]  ;;  %v1933_v19 = vor.u32 %v2541_v11, %v1932_v9 }
  0x29   :  { %697 = vmatpush.bf16.msra.mxu0 %v1789_v56  ;;  %v1934_v15 = vld [vmem:[#allocation8 + $0x1c8] sm:$0xf0]  ;;  %v2487_v18 = vld [vmem:[#allocation8 + $0x14] sm:$0xf0]  ;;  %v1745_v20 = vor.u32 %v2490_v12, %v1742_v13  ;;  %v1908_v21 = vld [vmem:[#allocation8 + $0x180] sm:$0xf] }
  0x2a   :  { %710 = vmatpush.bf16.msra.mxu1 %v1981_v57  ;;  %v2535_v22 = vld [vmem:[#allocation8 + $0x194] sm:$0xf0]  ;;  %v2484_v23 = vld [vmem:[#allocation8 + $0x4] sm:$0xf]  ;;  %v1937_v24 = vor.u32 %v2538_v14, %v1934_v15  ;;  %v1718_v25 = vld [vmem:[#allocation8 + $0x18] sm:$0xf0]  ;;  %v1717_v31 = vor.u32 %v2487_v18, %v1716_v17 }
  0x2b   :  { %723 = vmatpush.bf16.msra.mxu2 %v1793_v58  ;;  %v2532_v26 = vld [vmem:[#allocation8 + $0x184] sm:$0xf]  ;;  %v1910_v27 = vld [vmem:[#allocation8 + $0x198] sm:$0xf0]  ;;  %v1892_v28 = vld [vmem:[#allocation8 + $0x158] sm:$0xf]  ;;  %v1909_v35 = vor.u32 %v2535_v22, %v1908_v21  ;;  %v1721_v36 = vor.u32 %v2484_v23, %v1718_v25 }
  0x2c   :  { %736 = vmatpush.bf16.msra.mxu3 %v1985_v62  ;;  %v2530_v29 = vld [vmem:[#allocation8 + $0x16c] sm:$0xf0]  ;;  %v2084_v30 = vld [vmem:[#allocation8 + $0x2d8] sm:$0xf]  ;;  %v2527_v33 = vld [vmem:[#allocation8 + $0x15c] sm:$0xf]  ;;  %v1913_v39 = vor.u32 %v2532_v26, %v1910_v27 }
  0x2d   :  { %698 = vmatpush.bf16.msra.mxu0 %v1765_v4  ;;  %v2578_v32 = vld [vmem:[#allocation8 + $0x2ec] sm:$0xf0]  ;;  %v1894_v34 = vld [vmem:[#allocation8 + $0x170] sm:$0xf0]  ;;  %v2575_v37 = vld [vmem:[#allocation8 + $0x2dc] sm:$0xf]  ;;  %v1893_v40 = vor.u32 %v2530_v29, %v1892_v28 }
  0x2e   :  { %711 = vmatpush.bf16.msra.mxu1 %v1957_v5  ;;  %v2086_v38 = vld [vmem:[#allocation8 + $0x2f0] sm:$0xf0]  ;;  %v2085_v41 = vor.u32 %v2578_v32, %v2084_v30  ;;  %v1897_v42 = vor.u32 %v2527_v33, %v1894_v34  ;;  %v1868_v43 = vld [vmem:[#allocation8 + $0x128] sm:$0xf]  ;;  %v2524_v44 = vld [vmem:[#allocation8 + $0x13c] sm:$0xf0] }
  0x2f   :  { %724 = vmatpush.bf16.msra.mxu2 %v1769_v6  ;;  %v2060_v45 = vld [vmem:[#allocation8 + $0x2a8] sm:$0xf]  ;;  %v2089_v46 = vor.u32 %v2575_v37, %v2086_v38  ;;  %v2572_v47 = vld [vmem:[#allocation8 + $0x2bc] sm:$0xf0]  ;;  %v2521_v48 = vld [vmem:[#allocation8 + $0x12c] sm:$0xf]  ;;  %v1869_v52 = vor.u32 %v2524_v44, %v1868_v43 }
  0x30   :  { %737 = vmatpush.bf16.msra.mxu3 %v1961_v10  ;;  %v1870_v49 = vld [vmem:[#allocation8 + $0x140] sm:$0xf0]  ;;  %v2569_v50 = vld [vmem:[#allocation8 + $0x2ac] sm:$0xf]  ;;  %v1844_v53 = vld [vmem:[#allocation8 + $0xf8] sm:$0xf]  ;;  %v2061_v55 = vor.u32 %v2572_v47, %v2060_v45 }
  0x31   :  { %699 = vmatpush.bf16.msra.mxu0 %v1741_v16  ;;  %v2062_v51 = vld [vmem:[#allocation8 + $0x2c0] sm:$0xf0]  ;;  %v2518_v54 = vld [vmem:[#allocation8 + $0x10c] sm:$0xf0]  ;;  %v1873_v56 = vor.u32 %v2521_v48, %v1870_v49  ;;  %v2036_v57 = vld [vmem:[#allocation8 + $0x278] sm:$0xf] }
  0x32   :  { %712 = vmatpush.bf16.msra.mxu1 %v1933_v19  ;;  %v2566_v58 = vld [vmem:[#allocation8 + $0x28c] sm:$0xf0]  ;;  %v96_v59 = vld [vmem:[#allocation3] sm:$0x3]  ;;  %v2065_v60 = vor.u32 %v2569_v50, %v2062_v51  ;;  %v1846_v62 = vld [vmem:[#allocation8 + $0x110] sm:$0xf0]  ;;  %v1845_v1 = vor.u32 %v2518_v54, %v1844_v53 }
  0x33   :  { %725 = vmatpush.bf16.msra.mxu2 %v1745_v20  ;;  %v2515_v61 = vld [vmem:[#allocation8 + $0xfc] sm:$0xf]  ;;  %195 = vst [vmem:[#allocation1] ss:$9 sm:$0xff] %v96_v59  ;;  %v2038_v0 = vld [vmem:[#allocation8 + $0x290] sm:$0xf0]  ;;  %v2037_v2 = vor.u32 %v2566_v58, %v2036_v57 }
  0x34   :  { %738 = vmatpush.bf16.msra.mxu3 %v1937_v24  ;;  %v2563_v63 = vld [vmem:[#allocation8 + $0x27c] sm:$0xf]  ;;  %v1849_v3 = vor.u32 %v2515_v61, %v1846_v62  ;;  %v1820_v4 = vld [vmem:[#allocation8 + $0xc8] sm:$0xf]  ;;  %v2512_v5 = vld [vmem:[#allocation8 + $0xdc] sm:$0xf0] }
  0x35   :  { %700 = vmatpush.bf16.msra.mxu0 %v1717_v31  ;;  %v2012_v6 = vld [vmem:[#allocation8 + $0x248] sm:$0xf]  ;;  %v2041_v7 = vor.u32 %v2563_v63, %v2038_v0  ;;  %v2560_v8 = vld [vmem:[#allocation8 + $0x25c] sm:$0xf0]  ;;  %v2509_v9 = vld [vmem:[#allocation8 + $0xcc] sm:$0xf]  ;;  %v1821_v13 = vor.u32 %v2512_v5, %v1820_v4 }
  0x36   :  { %713 = vmatpush.bf16.msra.mxu1 %v1909_v35  ;;  %v1822_v10 = vld [vmem:[#allocation8 + $0xe0] sm:$0xf0]  ;;  %v2557_v11 = vld [vmem:[#allocation8 + $0x24c] sm:$0xf]  ;;  %v1796_v14 = vld [vmem:[#allocation8 + $0x98] sm:$0xf]  ;;  %v2013_v16 = vor.u32 %v2560_v8, %v2012_v6 }
  0x37   :  { %726 = vmatpush.bf16.msra.mxu2 %v1721_v36  ;;  %v2014_v12 = vld [vmem:[#allocation8 + $0x260] sm:$0xf0]  ;;  %v2506_v15 = vld [vmem:[#allocation8 + $0xac] sm:$0xf0]  ;;  %v1825_v17 = vor.u32 %v2509_v9, %v1822_v10  ;;  %v1988_v18 = vld [vmem:[#allocation8 + $0x218] sm:$0xf] }
  0x38   :  { %739 = vmatpush.bf16.msra.mxu3 %v1913_v39  ;;  %v2017_v21 = vor.u32 %v2557_v11, %v2014_v12  ;;  %v2554_v22 = vld [vmem:[#allocation8 + $0x22c] sm:$0xf0]  ;;  %v2503_v23 = vld [vmem:[#allocation8 + $0x9c] sm:$0xf]  ;;  %v1798_v24 = vld [vmem:[#allocation8 + $0xb0] sm:$0xf0]  ;;  %v1797_v27 = vor.u32 %v2506_v15, %v1796_v14 }
  0x39   :  { %745 = vmatpush.bf16.msrb.mxu0 %v1893_v40  ;;  %v2551_v25 = vld [vmem:[#allocation8 + $0x21c] sm:$0xf]  ;;  %v1990_v26 = vld [vmem:[#allocation8 + $0x230] sm:$0xf0]  ;;  %v1989_v28 = vor.u32 %v2554_v22, %v1988_v18  ;;  %v1801_v29 = vor.u32 %v2503_v23, %v1798_v24  ;;  %v1772_v30 = vld [vmem:[#allocation8 + $0x68] sm:$0xf] }
  0x3a   :  { %758 = vmatpush.bf16.msrb.mxu1 %v2085_v41  ;;  %v2904_v19 = vld [vmem:[#allocation1] sm:$0xff]  ;;  %v2906_v20 = vld [vmem:[#allocation1 + $0x9] sm:$0xff]  ;;  %v2500_v31 = vld [vmem:[#allocation8 + $0x7c] sm:$0xf0]  ;;  %v1993_v33 = vor.u32 %v2551_v25, %v1990_v26  ;;  %vm860_vm0 = vcmask 1040384   ;;  %vm864_vm1 = vcmask 1043459  }
  0x3b   :  { %771 = vmatpush.bf16.msrb.mxu2 %v1897_v42  ;;  %701 = vmatmul.bf16.vlgmr.msra.gmra.mxu0 %v2904_v19  ;;  %v1964_v32 = vld [vmem:[#allocation8 + $0x1e8] sm:$0xf]  ;;  %v2548_v34 = vld [vmem:[#allocation8 + $0x1fc] sm:$0xf0]  ;;  %v2497_v35 = vld [vmem:[#allocation8 + $0x6c] sm:$0xf]  ;;  %v1773_v39 = vor.u32 %v2500_v31, %v1772_v30 }
  0x3c   :  { %784 = vmatpush.bf16.msrb.mxu3 %v2089_v46  ;;  %714 = vmatmul.bf16.vlgmr.msra.gmra.mxu1 %v2906_v20  ;;  %v1774_v36 = vld [vmem:[#allocation8 + $0x80] sm:$0xf0]  ;;  %v2545_v37 = vld [vmem:[#allocation8 + $0x1ec] sm:$0xf]  ;;  %v1965_v40 = vor.u32 %v2548_v34, %v1964_v32  ;;  %v1748_v42 = vld [vmem:[#allocation8 + $0x38] sm:$0xf] }
  0x3d   :  { %746 = vmatpush.bf16.msrb.mxu0 %v1869_v52  ;;  %727 = vmatmul.bf16.vlgmr.msra.gmra.mxu2 %v2904_v19  ;;  %v1966_v38 = vld [vmem:[#allocation8 + $0x200] sm:$0xf0]  ;;  %v1777_v41 = vor.u32 %v2497_v35, %v1774_v36  ;;  %v2494_v43 = vld [vmem:[#allocation8 + $0x4c] sm:$0xf0]  ;;  %v1940_v44 = vld [vmem:[#allocation8 + $0x1b8] sm:$0xf] }
  0x3e   :  { %759 = vmatpush.bf16.msrb.mxu1 %v2061_v55  ;;  %740 = vmatmul.bf16.vlgmr.msra.gmra.mxu3 %v2906_v20  ;;  %v1969_v45 = vor.u32 %v2545_v37, %v1966_v38  ;;  %v2542_v46 = vld [vmem:[#allocation8 + $0x1cc] sm:$0xf0]  ;;  %v2491_v47 = vld [vmem:[#allocation8 + $0x3c] sm:$0xf]  ;;  %v1750_v48 = vld [vmem:[#allocation8 + $0x50] sm:$0xf0]  ;;  %v1749_v51 = vor.u32 %v2494_v43, %v1748_v42 }
  0x3f   :  { %772 = vmatpush.bf16.msrb.mxu2 %v1873_v56  ;;  %v2539_v49 = vld [vmem:[#allocation8 + $0x1bc] sm:$0xf]  ;;  %v1942_v50 = vld [vmem:[#allocation8 + $0x1d0] sm:$0xf0]  ;;  %v1724_v52 = vld [vmem:[#allocation8 + $0x8] sm:$0xf]  ;;  %v1941_v54 = vor.u32 %v2542_v46, %v1940_v44  ;;  %v1753_v55 = vor.u32 %v2491_v47, %v1750_v48 }
  0x40   :  { %785 = vmatpush.bf16.msrb.mxu3 %v2065_v60  ;;  %v2488_v53 = vld [vmem:[#allocation8 + $0x1c] sm:$0xf0]  ;;  %v1916_v56 = vld [vmem:[#allocation8 + $0x188] sm:$0xf]  ;;  %v2485_v58 = vld [vmem:[#allocation8 + $0xc] sm:$0xf]  ;;  %v1945_v59 = vor.u32 %v2539_v49, %v1942_v50 }
  0x41   :  { %747 = vmatpush.bf16.msrb.mxu0 %v1845_v1  ;;  %v2536_v57 = vld [vmem:[#allocation8 + $0x19c] sm:$0xf0]  ;;  %v1726_v60 = vld [vmem:[#allocation8 + $0x20] sm:$0xf0]  ;;  %v2533_v61 = vld [vmem:[#allocation8 + $0x18c] sm:$0xf] }
  0x42   :  { %760 = vmatpush.bf16.msrb.mxu1 %v2037_v2  ;;  %v1918_v62 = vld [vmem:[#allocation8 + $0x1a0] sm:$0xf0]  ;;  %v1900_v63 = vld [vmem:[#allocation8 + $0x160] sm:$0xf]  ;;  %v2531_v0 = vld [vmem:[#allocation8 + $0x174] sm:$0xf0]  ;;  %v1725_v2 = vor.u32 %v2488_v53, %v1724_v52  ;;  %v1917_v6 = vor.u32 %v2536_v57, %v1916_v56 }
  0x43   :  { %773 = vmatpush.bf16.msrb.mxu2 %v1849_v3  ;;  %v2092_v1 = vld [vmem:[#allocation8 + $0x2e0] sm:$0xf]  ;;  %v2579_v3 = vld [vmem:[#allocation8 + $0x2f4] sm:$0xf0]  ;;  %v2528_v4 = vld [vmem:[#allocation8 + $0x164] sm:$0xf]  ;;  %v1921_v10 = vor.u32 %v2533_v61, %v1918_v62  ;;  %v1901_v11 = vor.u32 %v2531_v0, %v1900_v63 }
  0x44   :  { %786 = vmatpush.bf16.msrb.mxu3 %v2041_v7  ;;  %v1902_v5 = vld [vmem:[#allocation8 + $0x178] sm:$0xf0]  ;;  %v1729_v7 = vor.u32 %v2485_v58, %v1726_v60  ;;  %v2576_v8 = vld [vmem:[#allocation8 + $0x2e4] sm:$0xf]  ;;  %v2093_v12 = vor.u32 %v2579_v3, %v2092_v1  ;;  %v1876_v14 = vld [vmem:[#allocation8 + $0x130] sm:$0xf] }
  0x45   :  { %748 = vmatpush.bf16.msrb.mxu0 %v1821_v13  ;;  %v2094_v9 = vld [vmem:[#allocation8 + $0x2f8] sm:$0xf0]  ;;  %v1905_v13 = vor.u32 %v2528_v4, %v1902_v5  ;;  %v2525_v15 = vld [vmem:[#allocation8 + $0x144] sm:$0xf0]  ;;  %v1878_v22 = vld [vmem:[#allocation8 + $0x148] sm:$0xf0] }
  0x46   :  { %761 = vmatpush.bf16.msrb.mxu1 %v2013_v16  ;;  %v2068_v16 = vld [vmem:[#allocation8 + $0x2b0] sm:$0xf]  ;;  %v2573_v18 = vld [vmem:[#allocation8 + $0x2c4] sm:$0xf0]  ;;  %v2570_v23 = vld [vmem:[#allocation8 + $0x2b4] sm:$0xf]  ;;  %v1877_v25 = vor.u32 %v2525_v15, %v1876_v14 }
  0x47   :  { %774 = vmatpush.bf16.msrb.mxu2 %v1825_v17  ;;  %v2097_v17 = vor.u32 %v2576_v8, %v2094_v9  ;;  %v2070_v24 = vld [vmem:[#allocation8 + $0x2c8] sm:$0xf0]  ;;  %v2069_v26 = vor.u32 %v2573_v18, %v2068_v16  ;;  %v2044_v30 = vld [vmem:[#allocation8 + $0x280] sm:$0xf]  ;;  %v2567_v32 = vld [vmem:[#allocation8 + $0x294] sm:$0xf0] }
  0x48   :  { %787 = vmatpush.bf16.msrb.mxu3 %v2017_v21  ;;  %v2522_v21 = vld [vmem:[#allocation8 + $0x134] sm:$0xf]  ;;  %v2073_v31 = vor.u32 %v2570_v23, %v2070_v24  ;;  %v1854_v34 = vld [vmem:[#allocation8 + $0x118] sm:$0xf0]  ;;  %v2564_v35 = vld [vmem:[#allocation8 + $0x284] sm:$0xf]  ;;  %v2045_v38 = vor.u32 %v2567_v32, %v2044_v30 }
  0x49   :  { %749 = vmatpush.bf16.msrb.mxu0 %v1797_v27  ;;  %v1881_v27 = vor.u32 %v2522_v21, %v1878_v22  ;;  %v2046_v36 = vld [vmem:[#allocation8 + $0x298] sm:$0xf0]  ;;  %v2020_v42 = vld [vmem:[#allocation8 + $0x250] sm:$0xf]  ;;  %v2561_v44 = vld [vmem:[#allocation8 + $0x264] sm:$0xf0] }
  0x4a   :  { %762 = vmatpush.bf16.msrb.mxu1 %v1989_v28  ;;  %v1852_v28 = vld [vmem:[#allocation8 + $0x100] sm:$0xf]  ;;  %v2049_v43 = vor.u32 %v2564_v35, %v2046_v36  ;;  %v1830_v46 = vld [vmem:[#allocation8 + $0xe8] sm:$0xf0]  ;;  %v2558_v47 = vld [vmem:[#allocation8 + $0x254] sm:$0xf]  ;;  %v2021_v50 = vor.u32 %v2561_v44, %v2020_v42 }
  0x4b   :  { %775 = vmatpush.bf16.msrb.mxu2 %v1801_v29  ;;  %v2519_v29 = vld [vmem:[#allocation8 + $0x114] sm:$0xf0]  ;;  %v2022_v48 = vld [vmem:[#allocation8 + $0x268] sm:$0xf0]  ;;  %v1804_v52 = vld [vmem:[#allocation8 + $0xa0] sm:$0xf] }
  0x4c   :  { %788 = vmatpush.bf16.msrb.mxu3 %v1993_v33  ;;  %v2516_v33 = vld [vmem:[#allocation8 + $0x104] sm:$0xf]  ;;  %v1853_v37 = vor.u32 %v2519_v29, %v1852_v28  ;;  %v2507_v53 = vld [vmem:[#allocation8 + $0xb4] sm:$0xf0]  ;;  %v1806_v58 = vld [vmem:[#allocation8 + $0xb8] sm:$0xf0] }
  0x4d   :  { %750 = vmatpush.bf16.msrb.mxu0 %v1773_v39  ;;  %v1857_v39 = vor.u32 %v2516_v33, %v1854_v34  ;;  %v2555_v56 = vld [vmem:[#allocation8 + $0x234] sm:$0xf0]  ;;  %v2504_v57 = vld [vmem:[#allocation8 + $0xa4] sm:$0xf]  ;;  %v1998_v60 = vld [vmem:[#allocation8 + $0x238] sm:$0xf0]  ;;  %v1805_v61 = vor.u32 %v2507_v53, %v1804_v52 }
  0x4e   :  { %763 = vmatpush.bf16.msrb.mxu1 %v1965_v40  ;;  %v1828_v40 = vld [vmem:[#allocation8 + $0xd0] sm:$0xf]  ;;  %v1809_v63 = vor.u32 %v2504_v57, %v1806_v58  ;;  %v2501_v1 = vld [vmem:[#allocation8 + $0x84] sm:$0xf0]  ;;  %v2498_v5 = vld [vmem:[#allocation8 + $0x74] sm:$0xf] }
  0x4f   :  { %776 = vmatpush.bf16.msrb.mxu2 %v1777_v41  ;;  %v2513_v41 = vld [vmem:[#allocation8 + $0xe4] sm:$0xf0]  ;;  %v1780_v0 = vld [vmem:[#allocation8 + $0x70] sm:$0xf]  ;;  %v1974_v8 = vld [vmem:[#allocation8 + $0x208] sm:$0xf0] }
  0x50   :  { %789 = vmatpush.bf16.msrb.mxu3 %v1969_v45  ;;  %v2510_v45 = vld [vmem:[#allocation8 + $0xd4] sm:$0xf]  ;;  %v1829_v49 = vor.u32 %v2513_v41, %v1828_v40  ;;  %v2549_v4 = vld [vmem:[#allocation8 + $0x204] sm:$0xf0]  ;;  %v1781_v9 = vor.u32 %v2501_v1, %v1780_v0  ;;  %v1948_v14 = vld [vmem:[#allocation8 + $0x1c0] sm:$0xf] }
  0x51   :  { %751 = vmatpush.bf16.msrb.mxu0 %v1749_v51  ;;  %v1833_v51 = vor.u32 %v2510_v45, %v1830_v46  ;;  %v2543_v16 = vld [vmem:[#allocation8 + $0x1d4] sm:$0xf0]  ;;  %v1758_v18 = vld [vmem:[#allocation8 + $0x58] sm:$0xf0]  ;;  %v2540_v21 = vld [vmem:[#allocation8 + $0x1c4] sm:$0xf] }
  0x52   :  { %764 = vmatpush.bf16.msrb.mxu1 %v1941_v54  ;;  %v1996_v54 = vld [vmem:[#allocation8 + $0x220] sm:$0xf]  ;;  %v1950_v22 = vld [vmem:[#allocation8 + $0x1d8] sm:$0xf0]  ;;  %v1732_v24 = vld [vmem:[#allocation8 + $0x10] sm:$0xf] }
  0x53   :  { %777 = vmatpush.bf16.msrb.mxu2 %v1753_v55  ;;  %v2025_v55 = vor.u32 %v2558_v47, %v2022_v48  ;;  %v1997_v62 = vor.u32 %v2555_v56, %v1996_v54  ;;  %v1924_v28 = vld [vmem:[#allocation8 + $0x190] sm:$0xf]  ;;  %v2537_v29 = vld [vmem:[#allocation8 + $0x1a4] sm:$0xf0]  ;;  %v2486_v30 = vld [vmem:[#allocation8 + $0x14] sm:$0xf] }
  0x54   :  { %790 = vmatpush.bf16.msrb.mxu3 %v1945_v59  ;;  %v2552_v59 = vld [vmem:[#allocation8 + $0x224] sm:$0xf]  ;;  %v1734_v32 = vld [vmem:[#allocation8 + $0x28] sm:$0xf0]  ;;  %v2534_v33 = vld [vmem:[#allocation8 + $0x194] sm:$0xf]  ;;  %v1925_v42 = vor.u32 %v2537_v29, %v1924_v28 }
  0x55   :  { %752 = vmatpush.bf16.msrb.mxu0 %v1725_v2  ;;  %v1972_v2 = vld [vmem:[#allocation8 + $0x1f0] sm:$0xf]  ;;  %v2001_v3 = vor.u32 %v2552_v59, %v1998_v60  ;;  %v1926_v34 = vld [vmem:[#allocation8 + $0x1a8] sm:$0xf0]  ;;  %v2625_v36 = vld [vmem:[#allocation9 + $0x164] sm:$0xf0] }
  0x56   :  { %765 = vmatpush.bf16.msrb.mxu1 %v1917_v6  ;;  %v1782_v6 = vld [vmem:[#allocation8 + $0x88] sm:$0xf0]  ;;  %v2268_v35 = vld [vmem:[#allocation9 + $0x150] sm:$0xf]  ;;  %v2622_v40 = vld [vmem:[#allocation9 + $0x154] sm:$0xf]  ;;  %v1929_v46 = vor.u32 %v2534_v33, %v1926_v34 }
  0x57   :  { %778 = vmatpush.bf16.msrb.mxu2 %v1729_v7  ;;  %v2546_v7 = vld [vmem:[#allocation8 + $0x1f4] sm:$0xf]  ;;  %v2270_v41 = vld [vmem:[#allocation9 + $0x168] sm:$0xf0]  ;;  %v2269_v47 = vor.u32 %v2625_v36, %v2268_v35  ;;  %v2436_v52 = vld [vmem:[#allocation9 + $0x2a0] sm:$0xf] }
  0x58   :  { %791 = vmatpush.bf16.msrb.mxu3 %v1921_v10  ;;  %753 = vmatmul.bf16.vlgmr.msrb.gmra.mxu0 %v2904_v19  ;;  %v1973_v10 = vor.u32 %v2549_v4, %v1972_v2  ;;  %v1977_v15 = vor.u32 %v2546_v7, %v1974_v8  ;;  %v2670_v44 = vld [vmem:[#allocation9 + $0x2d4] sm:$0xf]  ;;  %v2462_v45 = vld [vmem:[#allocation9 + $0x2e8] sm:$0xf0]  ;;  %v2667_v54 = vld [vmem:[#allocation9 + $0x2b4] sm:$0xf0] }
  0x59   :  { %797 = vmatpush.bf16.msra.mxu0 %v1901_v11  ;;  %766 = vmatmul.bf16.vlgmr.msrb.gmra.mxu1 %v2906_v20  ;;  %v1785_v11 = vor.u32 %v2498_v5, %v1782_v6  ;;  %v2465_v53 = vor.u32 %v2670_v44, %v2462_v45  ;;  %v2246_v56 = vld [vmem:[#allocation9 + $0x138] sm:$0xf0]  ;;  %v2664_v57 = vld [vmem:[#allocation9 + $0x2a4] sm:$0xf]  ;;  %v2437_v60 = vor.u32 %v2667_v54, %v2436_v52  ;;  %v2412_v0 = vld [vmem:[#allocation9 + $0x270] sm:$0xf] }
  0x5a   :  { %810 = vmatpush.bf16.msra.mxu1 %v2093_v12  ;;  %779 = vmatmul.bf16.vlgmr.msrb.gmra.mxu2 %v2904_v19  ;;  %v1756_v12 = vld [vmem:[#allocation8 + $0x40] sm:$0xf]  ;;  %v2438_v58 = vld [vmem:[#allocation9 + $0x2b8] sm:$0xf0]  ;;  %v2661_v2 = vld [vmem:[#allocation9 + $0x284] sm:$0xf0] }
  0x5b   :  { %823 = vmatpush.bf16.msra.mxu2 %v1905_v13  ;;  %792 = vmatmul.bf16.vlgmr.msrb.gmra.mxu3 %v2906_v20  ;;  %v2495_v13 = vld [vmem:[#allocation8 + $0x54] sm:$0xf0]  ;;  %v2441_v1 = vor.u32 %v2664_v57, %v2438_v58  ;;  %v2222_v4 = vld [vmem:[#allocation9 + $0x108] sm:$0xf0]  ;;  %v2658_v5 = vld [vmem:[#allocation9 + $0x274] sm:$0xf]  ;;  %v2413_v8 = vor.u32 %v2661_v2, %v2412_v0 }
  0x5c   :  { %836 = vmatpush.bf16.msra.mxu3 %v2097_v17  ;;  %v2492_v17 = vld [vmem:[#allocation8 + $0x44] sm:$0xf]  ;;  %v1757_v23 = vor.u32 %v2495_v13, %v1756_v12  ;;  %v2414_v6 = vld [vmem:[#allocation9 + $0x288] sm:$0xf0]  ;;  %v2388_v12 = vld [vmem:[#allocation9 + $0x240] sm:$0xf] }
  0x5d   :  { %798 = vmatpush.bf16.msra.mxu0 %v1877_v25  ;;  %v2489_v25 = vld [vmem:[#allocation8 + $0x24] sm:$0xf0]  ;;  %v2417_v13 = vor.u32 %v2658_v5, %v2414_v6  ;;  %v2174_v28 = vld [vmem:[#allocation9 + $0xa8] sm:$0xf0]  ;;  %v2646_v29 = vld [vmem:[#allocation9 + $0x214] sm:$0xf] }
  0x5e   :  { %811 = vmatpush.bf16.msra.mxu1 %v2069_v26  ;;  %v1949_v26 = vor.u32 %v2543_v16, %v1948_v14  ;;  %v2655_v14 = vld [vmem:[#allocation9 + $0x254] sm:$0xf0]  ;;  %v2652_v16 = vld [vmem:[#allocation9 + $0x244] sm:$0xf]  ;;  %v2148_v34 = vld [vmem:[#allocation9 + $0x60] sm:$0xf] }
  0x5f   :  { %824 = vmatpush.bf16.msra.mxu2 %v1881_v27  ;;  %v1761_v27 = vor.u32 %v2492_v17, %v1758_v18  ;;  %v2390_v17 = vld [vmem:[#allocation9 + $0x258] sm:$0xf0]  ;;  %v2595_v35 = vld [vmem:[#allocation9 + $0x74] sm:$0xf0]  ;;  %v2340_v36 = vld [vmem:[#allocation9 + $0x1e0] sm:$0xf] }
  0x60   :  { %837 = vmatpush.bf16.msra.mxu3 %v2073_v31  ;;  %v1953_v31 = vor.u32 %v2540_v21, %v1950_v22  ;;  %v2172_v22 = vld [vmem:[#allocation9 + $0x90] sm:$0xf]  ;;  %v2126_v52 = vld [vmem:[#allocation9 + $0x48] sm:$0xf0]  ;;  %v2583_v57 = vld [vmem:[#allocation9 + $0x14] sm:$0xf0] }
  0x61   :  { %799 = vmatpush.bf16.msra.mxu0 %v1853_v37  ;;  %v2460_v37 = vld [vmem:[#allocation9 + $0x2d0] sm:$0xf]  ;;  %v2318_v54 = vld [vmem:[#allocation9 + $0x1c8] sm:$0xf0]  ;;  %v2292_v58 = vld [vmem:[#allocation9 + $0x180] sm:$0xf] }
  0x62   :  { %812 = vmatpush.bf16.msra.mxu1 %v2045_v38  ;;  %v1733_v38 = vor.u32 %v2489_v25, %v1732_v24  ;;  %v2364_v24 = vld [vmem:[#allocation9 + $0x210] sm:$0xf]  ;;  %v2393_v25 = vor.u32 %v2652_v16, %v2390_v17  ;;  %v2920_v0 = vld [vmem:[#allocation6] sm:$0x3]  ;;  %v2628_v2 = vld [vmem:[#allocation9 + $0x184] sm:$0xf] }
  0x63   :  { %825 = vmatpush.bf16.msra.mxu2 %v1857_v39  ;;  %v2673_v39 = vld [vmem:[#allocation9 + $0x2e4] sm:$0xf0]  ;;  %v2626_v5 = vld [vmem:[#allocation9 + $0x16c] sm:$0xf0]  ;;  %v2468_v6 = vld [vmem:[#allocation9 + $0x2d8] sm:$0xf] }
  0x64   :  { %838 = vmatpush.bf16.msra.mxu3 %v2049_v43  ;;  %v1737_v43 = vor.u32 %v2486_v30, %v1734_v32  ;;  %v2461_v48 = vor.u32 %v2673_v39, %v2460_v37  ;;  %v2366_v30 = vld [vmem:[#allocation9 + $0x228] sm:$0xf0]  ;;  %v2592_v39 = vld [vmem:[#allocation9 + $0x64] sm:$0xf]  ;;  %vm862_vm2 = vcmask 1041408   ;;  %vm866_vm3 = vcmask 1044483  }
  0x65   :  { %800 = vmatpush.bf16.msra.mxu0 %v1829_v49  ;;  %v2273_v49 = vor.u32 %v2622_v40, %v2270_v41  ;;  %v2369_v37 = vor.u32 %v2646_v29, %v2366_v30  ;;  %v2150_v40 = vld [vmem:[#allocation9 + $0x78] sm:$0xf0]  ;;  %v2640_v41 = vld [vmem:[#allocation9 + $0x1e4] sm:$0xf]  ;;  %v2665_v30 = vld [vmem:[#allocation9 + $0x2ac] sm:$0xf] }
  0x66   :  { %813 = vmatpush.bf16.msra.mxu1 %v2021_v50  ;;  %v2244_v50 = vld [vmem:[#allocation9 + $0x120] sm:$0xf]  ;;  %v2153_v45 = vor.u32 %v2592_v39, %v2150_v40  ;;  %v2662_v39 = vld [vmem:[#allocation9 + $0x28c] sm:$0xf0]  ;;  %v2611_v40 = vld [vmem:[#allocation9 + $0xfc] sm:$0xf] }
  0x67   :  { %826 = vmatpush.bf16.msra.mxu2 %v1833_v51  ;;  %v2619_v51 = vld [vmem:[#allocation9 + $0x134] sm:$0xf0]  ;;  %vm868_vm4 = vcmask 1042432   ;;  %s1702_s24 = sshll.u32 %s2970_s6, 4  ;;  %s1703_s24 = int_to_ptr.hbm [resolvable:$true] %s1702_s24 }
  0x68   :  { %839 = vmatpush.bf16.msra.mxu3 %v2025_v55  ;;  %v2616_v55 = vld [vmem:[#allocation9 + $0x124] sm:$0xf]  ;;  %v2245_v59 = vor.u32 %v2619_v51, %v2244_v50  ;;  %v2637_v50 = vld [vmem:[#allocation9 + $0x1c4] sm:$0xf0]  ;;  %v2586_v51 = vld [vmem:[#allocation9 + $0x34] sm:$0xf] }
  0x69   :  { %801 = vmatpush.bf16.msra.mxu0 %v1805_v61  ;;  %v2249_v61 = vor.u32 %v2616_v55, %v2246_v56  ;;  %v2100_v55 = vld [vmem:[#allocation9] sm:$0xf] }
  0x6a   :  { %814 = vmatpush.bf16.msra.mxu1 %v1997_v62  ;;  %v2220_v62 = vld [vmem:[#allocation9 + $0xf0] sm:$0xf] }
  0x6b   :  { %827 = vmatpush.bf16.msra.mxu2 %v1809_v63  ;;  %v2613_v63 = vld [vmem:[#allocation9 + $0x104] sm:$0xf0] }
  0x6c   :  { %840 = vmatpush.bf16.msra.mxu3 %v2001_v3  ;;  %v2610_v3 = vld [vmem:[#allocation9 + $0xf4] sm:$0xf]  ;;  %v2221_v7 = vor.u32 %v2613_v63, %v2220_v62  ;;  %v2580_v62 = vld [vmem:[#allocation9 + $0x4] sm:$0xf]  ;;  %v2102_v63 = vld [vmem:[#allocation9 + $0x18] sm:$0xf0] }
  0x6d   :  { %802 = vmatpush.bf16.msra.mxu0 %v1781_v9  ;;  %v2225_v9 = vor.u32 %v2610_v3, %v2222_v4  ;;  %v2294_v3 = vld [vmem:[#allocation9 + $0x198] sm:$0xf0]  ;;  %v2276_v4 = vld [vmem:[#allocation9 + $0x158] sm:$0xf] }
  0x6e   :  { %815 = vmatpush.bf16.msra.mxu1 %v1973_v10  ;;  %v2196_v10 = vld [vmem:[#allocation9 + $0xc0] sm:$0xf]  ;;  %v2297_v16 = vor.u32 %v2628_v2, %v2294_v3  ;;  %v2277_v17 = vor.u32 %v2626_v5, %v2276_v4  ;;  %v2182_v2 = vld [vmem:[#allocation9 + $0xb0] sm:$0xf0]  ;;  %v2647_v3 = vld [vmem:[#allocation9 + $0x21c] sm:$0xf] }
  0x6f   :  { %828 = vmatpush.bf16.msra.mxu2 %v1785_v11  ;;  %v2607_v11 = vld [vmem:[#allocation9 + $0xd4] sm:$0xf0]  ;;  %v2374_v4 = vld [vmem:[#allocation9 + $0x230] sm:$0xf0] }
  0x70   :  { %841 = vmatpush.bf16.msra.mxu3 %v1977_v15  ;;  %v2604_v15 = vld [vmem:[#allocation9 + $0xc4] sm:$0xf]  ;;  %v2197_v18 = vor.u32 %v2607_v11, %v2196_v10  ;;  %v2278_v10 = vld [vmem:[#allocation9 + $0x170] sm:$0xf0]  ;;  %v879_v11 = vperm.slane %v2920_v0, 0 }
  0x71   :  { %803 = vmatpush.bf16.msra.mxu0 %v1757_v23  ;;  %v2601_v23 = vld [vmem:[#allocation9 + $0xa4] sm:$0xf0] }
  0x72   :  { %816 = vmatpush.bf16.msra.mxu1 %v1949_v26  ;;  %v2649_v26 = vld [vmem:[#allocation9 + $0x224] sm:$0xf0] }
  0x73   :  { %829 = vmatpush.bf16.msra.mxu2 %v1761_v27  ;;  %v2598_v27 = vld [vmem:[#allocation9 + $0x94] sm:$0xf]  ;;  %v2365_v32 = vor.u32 %v2649_v26, %v2364_v24  ;;  %v2668_v26 = vld [vmem:[#allocation9 + $0x2bc] sm:$0xf0] }
  0x74   :  { %842 = vmatpush.bf16.msra.mxu3 %v1953_v31  ;;  %v2173_v31 = vor.u32 %v2601_v23, %v2172_v22  ;;  %v2177_v33 = vor.u32 %v2598_v27, %v2174_v28  ;;  %v2620_v22 = vld [vmem:[#allocation9 + $0x13c] sm:$0xf0]  ;;  %v2444_v23 = vld [vmem:[#allocation9 + $0x2a8] sm:$0xf]  ;;  %v2617_v27 = vld [vmem:[#allocation9 + $0x12c] sm:$0xf] }
  0x75   :  { %804 = vmatpush.bf16.msra.mxu0 %v1733_v38  ;;  %v2643_v38 = vld [vmem:[#allocation9 + $0x1f4] sm:$0xf0]  ;;  %v2254_v28 = vld [vmem:[#allocation9 + $0x140] sm:$0xf0] }
  0x76   :  { %817 = vmatpush.bf16.msra.mxu1 %v1925_v42  ;;  %v2342_v42 = vld [vmem:[#allocation9 + $0x1f8] sm:$0xf0]  ;;  %v2341_v44 = vor.u32 %v2643_v38, %v2340_v36  ;;  %v2614_v36 = vld [vmem:[#allocation9 + $0x10c] sm:$0xf0] }
  0x77   :  { %830 = vmatpush.bf16.msra.mxu2 %v1737_v43  ;;  %v2149_v43 = vor.u32 %v2595_v35, %v2148_v34  ;;  %v2257_v34 = vor.u32 %v2617_v27, %v2254_v28  ;;  %v2228_v35 = vld [vmem:[#allocation9 + $0xf8] sm:$0xf]  ;;  %v2134_v27 = vld [vmem:[#allocation9 + $0x50] sm:$0xf0]  ;;  %v2635_v28 = vld [vmem:[#allocation9 + $0x1bc] sm:$0xf] }
  0x78   :  { %843 = vmatpush.bf16.msra.mxu3 %v1929_v46  ;;  %805 = vmatmul.bf16.vlgmr.msra.gmra.mxu0 %v2904_v19  ;;  %v2124_v46 = vld [vmem:[#allocation9 + $0x30] sm:$0xf] }
  0x79   :  { %1461 = vmatpush.bf16.msrb.mxu0 %v2269_v47  ;;  %818 = vmatmul.bf16.vlgmr.msra.gmra.mxu1 %v2906_v20  ;;  %v2589_v47 = vld [vmem:[#allocation9 + $0x44] sm:$0xf0] }
  0x7a   :  { %1474 = vmatpush.bf16.msrb.mxu1 %v2461_v48  ;;  %831 = vmatmul.bf16.vlgmr.msra.gmra.mxu2 %v2904_v19  ;;  %v2198_v19 = vld [vmem:[#allocation9 + $0xd8] sm:$0xf0]  ;;  %v2316_v48 = vld [vmem:[#allocation9 + $0x1b0] sm:$0xf]  ;;  %v2125_v56 = vor.u32 %v2589_v47, %v2124_v46  ;;  %v2204_v47 = vld [vmem:[#allocation9 + $0xc8] sm:$0xf] }
  0x7b   :  { %1487 = vmatpush.bf16.msrb.mxu2 %v2273_v49  ;;  %844 = vmatmul.bf16.vlgmr.msra.gmra.mxu3 %v2906_v20  ;;  %v2389_v20 = vor.u32 %v2655_v14, %v2388_v12  ;;  %v2201_v21 = vor.u32 %v2604_v15, %v2198_v19  ;;  %v2345_v49 = vor.u32 %v2640_v41, %v2342_v42  ;;  %v2671_v14 = vld [vmem:[#allocation9 + $0x2dc] sm:$0xf]  ;;  %v2470_v15 = vld [vmem:[#allocation9 + $0x2f0] sm:$0xf0]  ;;  %v880_v19 = vperm.slane %v2920_v0, 1 }
  0x7c   :  { %1500 = vmatpush.bf16.msrb.mxu3 %v2465_v53  ;;  %v2634_v53 = vld [vmem:[#allocation9 + $0x1b4] sm:$0xf]  ;;  %v2473_v24 = vor.u32 %v2671_v14, %v2470_v15  ;;  %v2659_v42 = vld [vmem:[#allocation9 + $0x27c] sm:$0xf]  ;;  %v2158_v14 = vld [vmem:[#allocation9 + $0x80] sm:$0xf0] }
  0x7d   :  { %1462 = vmatpush.bf16.msrb.mxu0 %v2245_v59  ;;  %v2631_v59 = vld [vmem:[#allocation9 + $0x194] sm:$0xf0]  ;;  %v2926_v29 = vpack.c.bf16 %v880_v19, %v880_v19  ;;  %v2230_v41 = vld [vmem:[#allocation9 + $0x110] sm:$0xf0]  ;;  %v2641_v15 = vld [vmem:[#allocation9 + $0x1ec] sm:$0xf] }
  0x7e   :  { %1475 = vmatpush.bf16.msrb.mxu1 %v2437_v60  ;;  %v2317_v60 = vor.u32 %v2637_v50, %v2316_v48  ;;  %v2293_v12 = vor.u32 %v2631_v59, %v2292_v58  ;;  %v2233_v46 = vor.u32 %v2611_v40, %v2230_v41  ;;  %v2608_v48 = vld [vmem:[#allocation9 + $0xdc] sm:$0xf0]  ;;  %v2180_v59 = vld [vmem:[#allocation9 + $0x98] sm:$0xf]  ;;  %v2350_v19 = vld [vmem:[#allocation9 + $0x200] sm:$0xf0] }
  0x7f   :  { %1488 = vmatpush.bf16.msrb.mxu2 %v2249_v61  ;;  %v2129_v61 = vor.u32 %v2586_v51, %v2126_v52  ;;  %v2656_v51 = vld [vmem:[#allocation9 + $0x25c] sm:$0xf0]  ;;  %v2605_v52 = vld [vmem:[#allocation9 + $0xcc] sm:$0xf]  ;;  %v2110_v40 = vld [vmem:[#allocation9 + $0x20] sm:$0xf0] }
  0x80   :  { %1501 = vmatpush.bf16.msrb.mxu3 %v2441_v1  ;;  %v2321_v1 = vor.u32 %v2634_v53, %v2318_v54  ;;  %v2206_v53 = vld [vmem:[#allocation9 + $0xe0] sm:$0xf0]  ;;  %v2653_v54 = vld [vmem:[#allocation9 + $0x24c] sm:$0xf] }
  0x81   :  { %1463 = vmatpush.bf16.msrb.mxu0 %v2221_v7  ;;  %v2674_v7 = vld [vmem:[#allocation9 + $0x2ec] sm:$0xf0]  ;;  %v2209_v58 = vor.u32 %v2605_v52, %v2206_v53  ;;  %v2629_v41 = vld [vmem:[#allocation9 + $0x18c] sm:$0xf]  ;;  %v2672_v52 = vld [vmem:[#allocation9 + $0x2e4] sm:$0xf] }
  0x82   :  { %1476 = vmatpush.bf16.msrb.mxu1 %v2413_v8  ;;  %v2101_v8 = vor.u32 %v2583_v57, %v2100_v55  ;;  %v2398_v55 = vld [vmem:[#allocation9 + $0x260] sm:$0xf0]  ;;  %v2478_v53 = vld [vmem:[#allocation9 + $0x2f8] sm:$0xf0] }
  0x83   :  { %1489 = vmatpush.bf16.msrb.mxu2 %v2225_v9  ;;  %v2623_v9 = vld [vmem:[#allocation9 + $0x15c] sm:$0xf] }
  0x84   :  { %1502 = vmatpush.bf16.msrb.mxu3 %v2417_v13  ;;  %v2105_v13 = vor.u32 %v2580_v62, %v2102_v63  ;;  %v2401_v62 = vor.u32 %v2653_v54, %v2398_v55  ;;  %v2650_v63 = vld [vmem:[#allocation9 + $0x22c] sm:$0xf0] }
  0x85   :  { %1464 = vmatpush.bf16.msrb.mxu0 %v2197_v18  ;;  %v2469_v18 = vor.u32 %v2674_v7, %v2468_v6 }
  0x86   :  { %1477 = vmatpush.bf16.msrb.mxu1 %v2389_v20  ;;  %v2281_v20 = vor.u32 %v2623_v9, %v2278_v10  ;;  %v2596_v9 = vld [vmem:[#allocation9 + $0x7c] sm:$0xf0]  ;;  %v2348_v10 = vld [vmem:[#allocation9 + $0x1e8] sm:$0xf] }
  0x87   :  { %1490 = vmatpush.bf16.msrb.mxu2 %v2201_v21  ;;  %v2252_v21 = vld [vmem:[#allocation9 + $0x128] sm:$0xf] }
  0x88   :  { %1503 = vmatpush.bf16.msrb.mxu3 %v2393_v25  ;;  %v2924_v25 = vpack.c.bf16 %v879_v11, %v879_v11  ;;  %v2377_v11 = vor.u32 %v2647_v3, %v2374_v4  ;;  %v2454_v3 = vld [vmem:[#allocation9 + $0x2c8] sm:$0xf0] }
  0x89   :  { %1465 = vmatpush.bf16.msrb.mxu0 %v2173_v31  ;;  %v2446_v31 = vld [vmem:[#allocation9 + $0x2c0] sm:$0xf0] }
  0x8a   :  { %1478 = vmatpush.bf16.msrb.mxu1 %v2365_v32  ;;  %v2253_v32 = vor.u32 %v2620_v22, %v2252_v21  ;;  %v2449_v38 = vor.u32 %v2665_v30, %v2446_v31  ;;  %v2590_v21 = vld [vmem:[#allocation9 + $0x4c] sm:$0xf0]  ;;  %v2324_v22 = vld [vmem:[#allocation9 + $0x1b8] sm:$0xf]  ;;  %v2326_v30 = vld [vmem:[#allocation9 + $0x1d0] sm:$0xf0] }
  0x8b   :  { %1491 = vmatpush.bf16.msrb.mxu2 %v2177_v33  ;;  %v2445_v33 = vor.u32 %v2668_v26, %v2444_v23  ;;  %v2353_v23 = vor.u32 %v2641_v15, %v2350_v19  ;;  %v2587_v26 = vld [vmem:[#allocation9 + $0x3c] sm:$0xf] }
  0x8c   :  { %1504 = vmatpush.bf16.msrb.mxu3 %v2369_v37  ;;  %v2420_v37 = vld [vmem:[#allocation9 + $0x278] sm:$0xf]  ;;  %v2430_v15 = vld [vmem:[#allocation9 + $0x298] sm:$0xf0] }
  0x8d   :  { %1466 = vmatpush.bf16.msrb.mxu0 %v2149_v43  ;;  %v2422_v43 = vld [vmem:[#allocation9 + $0x290] sm:$0xf0] }
  0x8e   :  { %1479 = vmatpush.bf16.msrb.mxu1 %v2341_v44  ;;  %v2229_v44 = vor.u32 %v2614_v36, %v2228_v35  ;;  %v2425_v50 = vor.u32 %v2659_v42, %v2422_v43  ;;  %v2137_v35 = vor.u32 %v2587_v26, %v2134_v27  ;;  %v2300_v36 = vld [vmem:[#allocation9 + $0x188] sm:$0xf]  ;;  %v2302_v42 = vld [vmem:[#allocation9 + $0x1a0] sm:$0xf0]  ;;  %v2284_v43 = vld [vmem:[#allocation9 + $0x160] sm:$0xf] }
  0x8f   :  { %1492 = vmatpush.bf16.msrb.mxu2 %v2153_v45  ;;  %v2421_v45 = vor.u32 %v2662_v39, %v2420_v37  ;;  %v2632_v37 = vld [vmem:[#allocation9 + $0x19c] sm:$0xf0]  ;;  %v2329_v39 = vor.u32 %v2635_v28, %v2326_v30  ;;  %v2305_v54 = vor.u32 %v2629_v41, %v2302_v42  ;;  %v2214_v26 = vld [vmem:[#allocation9 + $0xe8] sm:$0xf0]  ;;  %v2654_v27 = vld [vmem:[#allocation9 + $0x254] sm:$0xf] }
  0x90   :  { %1505 = vmatpush.bf16.msrb.mxu3 %v2345_v49  ;;  %v2396_v49 = vld [vmem:[#allocation9 + $0x248] sm:$0xf]  ;;  %v2406_v28 = vld [vmem:[#allocation9 + $0x268] sm:$0xf0]  ;;  %v2382_v41 = vld [vmem:[#allocation9 + $0x238] sm:$0xf0] }
  0x91   :  { %1467 = vmatpush.bf16.msrb.mxu0 %v2125_v56  ;;  %v2205_v56 = vor.u32 %v2608_v48, %v2204_v47  ;;  %v2397_v57 = vor.u32 %v2656_v51, %v2396_v49  ;;  %v2675_v47 = vld [vmem:[#allocation9 + $0x2f4] sm:$0xf0]  ;;  %v2624_v48 = vld [vmem:[#allocation9 + $0x164] sm:$0xf]  ;;  %v2286_v49 = vld [vmem:[#allocation9 + $0x178] sm:$0xf0] }
  0x92   :  { %1480 = vmatpush.bf16.msrb.mxu1 %v2317_v60  ;;  %v2602_v60 = vld [vmem:[#allocation9 + $0xac] sm:$0xf0] }
  0x93   :  { %1493 = vmatpush.bf16.msrb.mxu2 %v2129_v61  ;;  %v2372_v61 = vld [vmem:[#allocation9 + $0x218] sm:$0xf]  ;;  %v2181_v5 = vor.u32 %v2602_v60, %v2180_v59  ;;  %v2621_v59 = vld [vmem:[#allocation9 + $0x144] sm:$0xf0]  ;;  %v2452_v60 = vld [vmem:[#allocation9 + $0x2b0] sm:$0xf] }
  0x94   :  { %1506 = vmatpush.bf16.msrb.mxu3 %v2321_v1  ;;  %v2599_v1 = vld [vmem:[#allocation9 + $0x9c] sm:$0xf]  ;;  %v2373_v6 = vor.u32 %v2650_v63, %v2372_v61  ;;  %v2481_v61 = vor.u32 %v2672_v52, %v2478_v53  ;;  %v2618_v63 = vld [vmem:[#allocation9 + $0x134] sm:$0xf]  ;;  %v2358_v53 = vld [vmem:[#allocation9 + $0x208] sm:$0xf0] }
  0x95   :  { %1468 = vmatpush.bf16.msrb.mxu0 %v2101_v8  ;;  %v2185_v7 = vor.u32 %v2599_v1, %v2182_v2  ;;  %v2156_v8 = vld [vmem:[#allocation9 + $0x68] sm:$0xf]  ;;  %v2262_v1 = vld [vmem:[#allocation9 + $0x148] sm:$0xf0]  ;;  %v2666_v2 = vld [vmem:[#allocation9 + $0x2b4] sm:$0xf] }
  0x96   :  { %1481 = vmatpush.bf16.msrb.mxu1 %v2293_v12  ;;  %v2644_v12 = vld [vmem:[#allocation9 + $0x1fc] sm:$0xf0]  ;;  %v2642_v52 = vld [vmem:[#allocation9 + $0x1f4] sm:$0xf] }
  0x97   :  { %1494 = vmatpush.bf16.msrb.mxu2 %v2105_v13  ;;  %v2593_v13 = vld [vmem:[#allocation9 + $0x6c] sm:$0xf] }
  0x98   :  { %1507 = vmatpush.bf16.msrb.mxu3 %v2297_v16  ;;  %1469 = vmatmul.bf16.vlgmr.msrb.gmra.mxu0 %v2924_v25  ;;  %v2157_v16 = vor.u32 %v2596_v9, %v2156_v8  ;;  %v2615_v8 = vld [vmem:[#allocation9 + $0x114] sm:$0xf0]  ;;  %v2428_v9 = vld [vmem:[#allocation9 + $0x280] sm:$0xf] }
  0x99   :  { %1513 = vmatpush.bf16.msra.mxu0 %v2277_v17  ;;  %1482 = vmatmul.bf16.vlgmr.msrb.gmra.mxu1 %v2926_v29  ;;  %v2349_v17 = vor.u32 %v2644_v12, %v2348_v10  ;;  %v2457_v10 = vor.u32 %v2666_v2, %v2454_v3  ;;  %v2612_v12 = vld [vmem:[#allocation9 + $0x104] sm:$0xf]  ;;  %v2142_v2 = vld [vmem:[#allocation9 + $0x58] sm:$0xf0] }
  0x9a   :  { %1526 = vmatpush.bf16.msra.mxu1 %v2469_v18  ;;  %1495 = vmatmul.bf16.vlgmr.msrb.gmra.mxu2 %v2924_v25  ;;  %v2161_v18 = vor.u32 %v2593_v13, %v2158_v14  ;;  %v2238_v13 = vld [vmem:[#allocation9 + $0x118] sm:$0xf0]  ;;  %v2660_v14 = vld [vmem:[#allocation9 + $0x284] sm:$0xf] }
  0x9b   :  { %1539 = vmatpush.bf16.msra.mxu2 %v2281_v20  ;;  %1508 = vmatmul.bf16.vlgmr.msrb.gmra.mxu3 %v2926_v29  ;;  %v2132_v20 = vld [vmem:[#allocation9 + $0x38] sm:$0xf]  ;;  %v2636_v3 = vld [vmem:[#allocation9 + $0x1c4] sm:$0xf] }
  0x9c   :  { %1552 = vmatpush.bf16.msra.mxu3 %v2473_v24  ;;  %v2638_v24 = vld [vmem:[#allocation9 + $0x1cc] sm:$0xf0]  ;;  %v2133_v31 = vor.u32 %v2590_v21, %v2132_v20  ;;  %v2609_v20 = vld [vmem:[#allocation9 + $0xe4] sm:$0xf0] }
  0x9d   :  { %1514 = vmatpush.bf16.msra.mxu0 %v2253_v32  ;;  %v2108_v32 = vld [vmem:[#allocation9 + $0x8] sm:$0xf]  ;;  %v2404_v21 = vld [vmem:[#allocation9 + $0x250] sm:$0xf] }
  0x9e   :  { %1527 = vmatpush.bf16.msra.mxu1 %v2445_v33  ;;  %v2584_v33 = vld [vmem:[#allocation9 + $0x1c] sm:$0xf0] }
  0x9f   :  { %1540 = vmatpush.bf16.msra.mxu2 %v2257_v34  ;;  %v2325_v34 = vor.u32 %v2638_v24, %v2324_v22  ;;  %v2433_v22 = vor.u32 %v2660_v14, %v2430_v15  ;;  %v2606_v24 = vld [vmem:[#allocation9 + $0xd4] sm:$0xf]  ;;  %v2118_v14 = vld [vmem:[#allocation9 + $0x28] sm:$0xf0] }
  0xa0   :  { %1553 = vmatpush.bf16.msra.mxu3 %v2449_v38  ;;  %v2581_v38 = vld [vmem:[#allocation9 + $0xc] sm:$0xf] }
  0xa1   :  { %1515 = vmatpush.bf16.msra.mxu0 %v2229_v44  ;;  %v2627_v44 = vld [vmem:[#allocation9 + $0x174] sm:$0xf0]  ;;  %v2113_v51 = vor.u32 %v2581_v38, %v2110_v40  ;;  %v2600_v38 = vld [vmem:[#allocation9 + $0xa4] sm:$0xf] }
  0xa2   :  { %1528 = vmatpush.bf16.msra.mxu1 %v2421_v45  ;;  %v2476_v45 = vld [vmem:[#allocation9 + $0x2e0] sm:$0xf]  ;;  %v2285_v55 = vor.u32 %v2627_v44, %v2284_v43  ;;  %v2648_v40 = vld [vmem:[#allocation9 + $0x224] sm:$0xf] }
  0xa3   :  { %1541 = vmatpush.bf16.msra.mxu2 %v2233_v46  ;;  %v2109_v46 = vor.u32 %v2584_v33, %v2108_v32  ;;  %v2217_v32 = vor.u32 %v2606_v24, %v2214_v26  ;;  %v2188_v33 = vld [vmem:[#allocation9 + $0xa0] sm:$0xf] }
  0xa4   :  { %1554 = vmatpush.bf16.msra.mxu3 %v2425_v50  ;;  %v2301_v50 = vor.u32 %v2632_v37, %v2300_v36  ;;  %v2409_v36 = vor.u32 %v2654_v27, %v2406_v28  ;;  %v2651_v37 = vld [vmem:[#allocation9 + $0x234] sm:$0xf0] }
  0xa5   :  { %1516 = vmatpush.bf16.msra.mxu0 %v2205_v56  ;;  %v2477_v56 = vor.u32 %v2675_v47, %v2476_v45  ;;  %v2164_v45 = vld [vmem:[#allocation9 + $0x70] sm:$0xf] }
  0xa6   :  { %1529 = vmatpush.bf16.msra.mxu1 %v2397_v57  ;;  %v2289_v57 = vor.u32 %v2624_v48, %v2286_v49  ;;  %v2356_v47 = vld [vmem:[#allocation9 + $0x1f0] sm:$0xf]  ;;  %v2385_v48 = vor.u32 %v2648_v40, %v2382_v41  ;;  %v2645_v49 = vld [vmem:[#allocation9 + $0x204] sm:$0xf0] }
  0xa7   :  { %1542 = vmatpush.bf16.msra.mxu2 %v2209_v58  ;;  %v2260_v58 = vld [vmem:[#allocation9 + $0x130] sm:$0xf] }
  0xa8   :  { %1555 = vmatpush.bf16.msra.mxu3 %v2401_v62  ;;  %v2669_v62 = vld [vmem:[#allocation9 + $0x2c4] sm:$0xf0]  ;;  %v2261_v4 = vor.u32 %v2621_v59, %v2260_v58  ;;  %v2140_v59 = vld [vmem:[#allocation9 + $0x40] sm:$0xf] }
  0xa9   :  { %1517 = vmatpush.bf16.msra.mxu0 %v2181_v5  ;;  %v2453_v5 = vor.u32 %v2669_v62, %v2452_v60  ;;  %v2591_v60 = vld [vmem:[#allocation9 + $0x54] sm:$0xf0]  ;;  %v2361_v62 = vor.u32 %v2642_v52, %v2358_v53 }
  0xaa   :  { %1530 = vmatpush.bf16.msra.mxu1 %v2373_v6  ;;  %v2265_v6 = vor.u32 %v2618_v63, %v2262_v1  ;;  %v2639_v63 = vld [vmem:[#allocation9 + $0x1d4] sm:$0xf0]  ;;  %v2588_v1 = vld [vmem:[#allocation9 + $0x44] sm:$0xf] }
  0xab   :  { %1543 = vmatpush.bf16.msra.mxu2 %v2185_v7  ;;  %v2236_v7 = vld [vmem:[#allocation9 + $0x100] sm:$0xf] }
  0xac   :  { %1556 = vmatpush.bf16.msra.mxu3 %v2377_v11  ;;  %v2663_v11 = vld [vmem:[#allocation9 + $0x294] sm:$0xf0]  ;;  %v2237_v19 = vor.u32 %v2615_v8, %v2236_v7  ;;  %v2145_v7 = vor.u32 %v2588_v1, %v2142_v2  ;;  %v2116_v8 = vld [vmem:[#allocation9 + $0x10] sm:$0xf] }
  0xad   :  { %1518 = vmatpush.bf16.msra.mxu0 %v2157_v16  ;;  %v2429_v16 = vor.u32 %v2663_v11, %v2428_v9  ;;  %v2585_v9 = vld [vmem:[#allocation9 + $0x24] sm:$0xf0] }
  0xae   :  { %1531 = vmatpush.bf16.msra.mxu1 %v2349_v17  ;;  %v2241_v17 = vor.u32 %v2612_v12, %v2238_v13  ;;  %v2633_v12 = vld [vmem:[#allocation9 + $0x1a4] sm:$0xf0]  ;;  %v2582_v13 = vld [vmem:[#allocation9 + $0x14] sm:$0xf] }
  0xaf   :  { %1544 = vmatpush.bf16.msra.mxu2 %v2161_v18  ;;  %v2212_v18 = vld [vmem:[#allocation9 + $0xd0] sm:$0xf] }
  0xb0   :  { %1557 = vmatpush.bf16.msra.mxu3 %v2353_v23  ;;  %v2657_v23 = vld [vmem:[#allocation9 + $0x264] sm:$0xf0]  ;;  %v2213_v30 = vor.u32 %v2609_v20, %v2212_v18  ;;  %v2117_v20 = vor.u32 %v2585_v9, %v2116_v8 }
  0xb1   :  { %1519 = vmatpush.bf16.msra.mxu0 %v2133_v31  ;;  %v2405_v31 = vor.u32 %v2657_v23, %v2404_v21  ;;  %v2121_v23 = vor.u32 %v2582_v13, %v2118_v14 }
  0xb2   :  { %1532 = vmatpush.bf16.msra.mxu1 %v2325_v34  ;;  %v2603_v34 = vld [vmem:[#allocation9 + $0xb4] sm:$0xf0] }
  0xb3   :  { %1545 = vmatpush.bf16.msra.mxu2 %v2137_v35  ;;  %v2380_v35 = vld [vmem:[#allocation9 + $0x220] sm:$0xf]  ;;  %v2189_v42 = vor.u32 %v2603_v34, %v2188_v33 }
  0xb4   :  { %1558 = vmatpush.bf16.msra.mxu3 %v2329_v39  ;;  %v2190_v39 = vld [vmem:[#allocation9 + $0xb8] sm:$0xf0]  ;;  %v2381_v43 = vor.u32 %v2651_v37, %v2380_v35  ;;  %v193_v37 = vld [vmem:[#allocation11] sm:$0x3f] }
  0xb5   :  { %1520 = vmatpush.bf16.msra.mxu0 %v2109_v46  ;;  %v2193_v44 = vor.u32 %v2600_v38, %v2190_v39  ;;  %v2597_v46 = vld [vmem:[#allocation9 + $0x84] sm:$0xf0]  ;;  %v682_v38 = vperm.slane %v193_v37, 1  ;;  %v684_v39 = vperm.slane %v193_v37, 3  ;;  %v683_v40 = vperm.slane %v193_v37, 2 }
  0xb6   :  { %1533 = vmatpush.bf16.msra.mxu1 %v2301_v50  ;;  %v2594_v50 = vld [vmem:[#allocation9 + $0x74] sm:$0xf]  ;;  %v681_v41 = vperm.slane %v193_v37, 0 }
  0xb7   :  { %1546 = vmatpush.bf16.msra.mxu2 %v2113_v51  ;;  %v2166_v51 = vld [vmem:[#allocation9 + $0x88] sm:$0xf0] }
  0xb8   :  { %1559 = vmatpush.bf16.msra.mxu3 %v2305_v54  ;;  %1521 = vmatmul.bf16.vlgmr.msra.gmra.mxu0 %v2924_v25  ;;  %v2936_v54 = vpop.f32.mrf.mxu0  ;;  %v2169_v58 = vor.u32 %v2594_v50, %v2166_v51 }
  0xb9   :  { %1565 = vmatpush.bf16.msrb.mxu0 %v2285_v55  ;;  %1534 = vmatmul.bf16.vlgmr.msra.gmra.mxu1 %v2926_v29  ;;  %v2165_v55 = vor.u32 %v2597_v46, %v2164_v45 }
  0xba   :  { %1578 = vmatpush.bf16.msrb.mxu1 %v2477_v56  ;;  %1547 = vmatmul.bf16.vlgmr.msra.gmra.mxu2 %v2924_v25  ;;  %v2938_v56 = vpop.f32.mrf.mxu1 }
  0xbb   :  { %1591 = vmatpush.bf16.msrb.mxu2 %v2289_v57  ;;  %1560 = vmatmul.bf16.vlgmr.msra.gmra.mxu3 %v2926_v29  ;;  %v2357_v57 = vor.u32 %v2645_v49, %v2356_v47  ;;  %v686_v49 = vperm.slane %v193_v37, 5 }
  0xbc   :  { %1604 = vmatpush.bf16.msrb.mxu3 %v2481_v61  ;;  %v2332_v61 = vld [vmem:[#allocation9 + $0x1c0] sm:$0xf] }
  0xbd   :  { %1566 = vmatpush.bf16.msrb.mxu0 %v2261_v4  ;;  %v2334_v4 = vld [vmem:[#allocation9 + $0x1d8] sm:$0xf0] }
  0xbe   :  { %1579 = vmatpush.bf16.msrb.mxu1 %v2453_v5  ;;  %v2141_v5 = vor.u32 %v2591_v60, %v2140_v59  ;;  %v2337_v11 = vor.u32 %v2636_v3, %v2334_v4 }
  0xbf   :  { %1592 = vmatpush.bf16.msrb.mxu2 %v2265_v6  ;;  %v2333_v6 = vor.u32 %v2639_v63, %v2332_v61 }
  0xc0   :  { %1605 = vmatpush.bf16.msrb.mxu3 %v2457_v10  ;;  %v2308_v10 = vld [vmem:[#allocation9 + $0x190] sm:$0xf]  ;;  %v728_v15 = vpop.f32.mrf.mxu2 }
  0xc1   :  { %1567 = vmatpush.bf16.msrb.mxu0 %v2237_v19  ;;  %v2630_v19 = vld [vmem:[#allocation9 + $0x194] sm:$0xf]  ;;  %v741_v18 = vpop.f32.mrf.mxu3 }
  0xc2   :  { %1580 = vmatpush.bf16.msrb.mxu1 %v2429_v16  ;;  %v2310_v16 = vld [vmem:[#allocation9 + $0x1a8] sm:$0xf0]  ;;  %v717_v21 = vpop.f32.mrf.mxu1 }
  0xc3   :  { %1593 = vmatpush.bf16.msrb.mxu2 %v2241_v17  ;;  %v704_v17 = vpop.f32.mrf.mxu0  ;;  %v2313_v24 = vor.u32 %v2630_v19, %v2310_v16 }
  0xc4   :  { %1606 = vmatpush.bf16.msrb.mxu3 %v2433_v22  ;;  %v2309_v22 = vor.u32 %v2633_v12, %v2308_v10 }
  0xc5   :  { %1568 = vmatpush.bf16.msrb.mxu0 %v2213_v30 }
  0xc6   :  { %1581 = vmatpush.bf16.msrb.mxu1 %v2405_v31 }
  0xc7   :  { %1594 = vmatpush.bf16.msrb.mxu2 %v2217_v32 }
  0xc8   :  { %1607 = vmatpush.bf16.msrb.mxu3 %v2409_v36  ;;  %v730_v26 = vpop.f32.mrf.mxu2 }
  0xc9   :  { %1569 = vmatpush.bf16.msrb.mxu0 %v2189_v42  ;;  %v743_v27 = vpop.f32.mrf.mxu3  ;;  %v729_v42 = vadd.f32 %v728_v15, %v682_v38 }
  0xca   :  { %1582 = vmatpush.bf16.msrb.mxu1 %v2381_v43  ;;  %v685_v43 = vperm.slane %v193_v37, 4 }
  0xcb   :  { %1595 = vmatpush.bf16.msrb.mxu2 %v2193_v44  ;;  %v742_v46 = vadd.f32 %v741_v18, %v729_v42 }
  0xcc   :  { %1608 = vmatpush.bf16.msrb.mxu3 %v2385_v48 }
  0xcd   :  { %1570 = vmatpush.bf16.msrb.mxu0 %v2165_v55  ;;  %v855_v55 = vrot.slane %v742_v46, 7 }
  0xce   :  { %1583 = vmatpush.bf16.msrb.mxu1 %v2357_v57 }
  0xcf   :  { %1596 = vmatpush.bf16.msrb.mxu2 %v2169_v58 }
  0xd0   :  { %1609 = vmatpush.bf16.msrb.mxu3 %v2361_v62  ;;  %v871_v62 = vlaneseq }
  0xd1   :  { %1571 = vmatpush.bf16.msrb.mxu0 %v2141_v5 }
  0xd2   :  { %1584 = vmatpush.bf16.msrb.mxu1 %v2333_v6  ;;  %vm873_vm5 = vcmp.lt.s32.totalorder %v871_v62, 768  ;;  %vm1692_vm14 = vcmp.lt.s32.totalorder %v871_v62, 256 }
  0xd3   :  { %1597 = vmatpush.bf16.msrb.mxu2 %v2145_v7 }
  0xd4   :  { %1610 = vmatpush.bf16.msrb.mxu3 %v2337_v11 }
  0xd5   :  { %1572 = vmatpush.bf16.msrb.mxu0 %v2117_v20  ;;  %v754_v28 = vpop.f32.mrf.mxu0 }
  0xd6   :  { %1585 = vmatpush.bf16.msrb.mxu1 %v2309_v22  ;;  %v767_v30 = vpop.f32.mrf.mxu1  ;;  %v755_v45 = vadd.f32 %v754_v28, %v683_v40 }
  0xd7   :  { %1598 = vmatpush.bf16.msrb.mxu2 %v2121_v23 }
  0xd8   :  { %1611 = vmatpush.bf16.msrb.mxu3 %v2313_v24  ;;  %1573 = vmatmul.bf16.vlgmr.msrb.gmra.mxu0 %v2924_v25  ;;  %v768_v52 = vadd.f32 %v767_v30, %v755_v45 }
  0xd9   :  { %1586 = vmatmul.bf16.vlgmr.msrb.gmra.mxu1 %v2926_v29 }
  0xda   :  { %1599 = vmatmul.bf16.vlgmr.msrb.gmra.mxu2 %v2924_v25  ;;  %v856_v63 = vrot.slane %v768_v52, 6 }
  0xdb   :  { %1612 = vmatmul.bf16.vlgmr.msrb.gmra.mxu3 %v2926_v29  ;;  %v703_v29 = vadd.f32 %v2936_v54, %v681_v41 }
  0xdd   :  { %v780_v31 = vpop.f32.mrf.mxu2  ;;  %v756_v33 = vpop.f32.mrf.mxu0  ;;  %v716_v53 = vadd.f32 %v2938_v56, %v703_v29 }
  0xde   :  { %v793_v32 = vpop.f32.mrf.mxu3  ;;  %v769_v34 = vpop.f32.mrf.mxu1  ;;  %v781_v44 = vadd.f32 %v780_v31, %v684_v39 }
  0xdf   :  { %v861_v2 = vsel %vm860_vm0, %v716_v53, %v855_v55 }
  0xe0   :  { %v794_v50 = vadd.f32 %v793_v32, %v781_v44  ;;  %v863_v5 = vsel %vm862_vm2, %v861_v2, %v856_v63 }
  0xe2   :  { %v857_v60 = vrot.slane %v794_v50, 5 }
  0xe5   :  { %v782_v35 = vpop.f32.mrf.mxu2 }
  0xe6   :  { %v795_v36 = vpop.f32.mrf.mxu3 }
  0xf5   :  { %v806_v25 = vpop.f32.mrf.mxu0 }
  0xf6   :  { %v807_v47 = vadd.f32 %v806_v25, %v685_v43  ;;  %v819_v48 = vpop.f32.mrf.mxu1 }
  0xf8   :  { %v820_v51 = vadd.f32 %v819_v48, %v807_v47 }
  0xfa   :  { %v858_v61 = vrot.slane %v820_v51, 4  ;;  %v1670_v51 = vld [vmem:[%s2969_s5] sm:$0x3]  ;;  %s2853_s5 = smov [#allocation12]  }
  0xfb   :  { %v1672_v55 = vperm.slane %v1670_v51, 0  ;;  %s1700_s21 = sshll.u32 %s2853_s5, 4  ;;  %s1701_s21 = int_to_ptr.vmem [resolvable:$true] %s1700_s21 }
  0xfc   :  { %v865_v56 = vsel %vm864_vm1, %v857_v60, %v858_v61 }
  0xfd   :  { %v832_v57 = vpop.f32.mrf.mxu2  ;;  %v808_v1 = vpop.f32.mrf.mxu0 }
  0xfe   :  { %v833_v58 = vadd.f32 %v832_v57, %v686_v49  ;;  %v845_v59 = vpop.f32.mrf.mxu3  ;;  %v821_v3 = vpop.f32.mrf.mxu1 }
 0x100   :  { %v846_v54 = vadd.f32 %v845_v59, %v833_v58  ;;  %v1673_v58 = vperm.slane %v1670_v51, 1 }
 0x102   :  { %v859_v4 = vrot.slane %v846_v54, 3 }
 0x104   :  { %v867_v6 = vsel %vm866_vm3, %v865_v56, %v859_v4 }
 0x105   :  { %v869_v7 = vsel %vm868_vm4, %v863_v5, %v867_v6  ;;  %v834_v8 = vpop.f32.mrf.mxu2 }
 0x106   :  { %v847_v9 = vpop.f32.mrf.mxu3  ;;  %875 = vst.msk [vmem:[#allocation2] sm:$0x3f] %vm873_vm5, %v869_v7 }
 0x10d   :  { %v2949_v22 = vld [vmem:[#allocation2] sm:$0x3f] }
 0x10e   :  { %v1643_v37 = vrot.slane %v2949_v22, 2 }
 0x115   :  { %v1470_v10 = vpop.f32.mrf.mxu0 }
 0x116   :  { %v1483_v11 = vpop.f32.mrf.mxu1 }
 0x117   :  { %v1484_v20 = vadd.f32 %v1483_v11, %v1470_v10 }
 0x11d   :  { %v1496_v12 = vpop.f32.mrf.mxu2  ;;  %v1472_v14 = vpop.f32.mrf.mxu0 }
 0x11e   :  { %v1509_v13 = vpop.f32.mrf.mxu3  ;;  %v1485_v15 = vpop.f32.mrf.mxu1 }
 0x11f   :  { %v1510_v19 = vadd.f32 %v1509_v13, %v1496_v12  ;;  %v1684_v13 = vrot.slane %v2949_v22, 4 }
 0x121   :  { %v1619_v18 = vrot.slane %v1510_v19, 7 }
 0x123   :  { %v1620_v21 = vsel %vm860_vm0, %v1484_v20, %v1619_v18 }
 0x124   :  { %v1622_v23 = vadd.f32 %v1620_v21, %v2949_v22 }
 0x125   :  { %v1498_v16 = vpop.f32.mrf.mxu2 }
 0x126   :  { %v1511_v17 = vpop.f32.mrf.mxu3  ;;  %v2482_v24 = vmul.f32 -1.442695, %v1622_v23 }
 0x128   :  { %2684 = vpow2.f32 %v2482_v24 }
 0x12e   :  { %v2685_v33 = vpop.eup %2684 }
 0x12f   :  { %v1626_v38 = vadd.f32 1.0, %v2685_v33 }
 0x131   :  { %2686 = vrcp.f32 %v1626_v38  ;;  %v1638_v1 = vand.u32 2147483648, %v1626_v38  ;;  %vm1632_vm7 = vweird.f32 %v1626_v38  ;;  %v1636_v3 = vand.u32 2147483647, %v1626_v38 }
 0x133   :  { %v1639_v7 = vor.u32 1.1754944e-38, %v1638_v1  ;;  %vm1637_vm9 = vcmp.eq.f32.partialorder %v1636_v3, 8.507059e+37 }
 0x135   :  { %v1522_v26 = vpop.f32.mrf.mxu0 }
 0x136   :  { %v1535_v27 = vpop.f32.mrf.mxu1 }
 0x137   :  { %v1536_v32 = vadd.f32 %v1535_v27, %v1522_v26  ;;  %v2687_v44 = vpop.eup %2686 }
 0x138   :  { %v1628_v29 = vmul.f32 %v2687_v44, %v1626_v38  ;;  %vm1633_vm6 = vweird.f32 %v2687_v44 }
 0x139   :  { %vm1634_vm8 = vmor %vm1632_vm7, %vm1633_vm6 }
 0x13a   :  { %v1629_v47 = vsub.f32 1.0, %v1628_v29 }
 0x13c   :  { %v1630_v52 = vmul.f32 %v2687_v44, %v1629_v47 }
 0x13d   :  { %v1548_v28 = vpop.f32.mrf.mxu2  ;;  %v1524_v34 = vpop.f32.mrf.mxu0 }
 0x13e   :  { %v1561_v30 = vpop.f32.mrf.mxu3  ;;  %v1537_v36 = vpop.f32.mrf.mxu1  ;;  %v1631_v61 = vadd.f32 %v2687_v44, %v1630_v52 }
 0x13f   :  { %v1562_v31 = vadd.f32 %v1561_v30, %v1548_v28 }
 0x140   :  { %v1635_v6 = vsel %vm1634_vm8, %v2687_v44, %v1631_v61 }
 0x141   :  { %v1647_v35 = vrot.slane %v1562_v31, 7  ;;  %v1640_v9 = vsel %vm1637_vm9, %v1639_v7, %v1635_v6 }
 0x143   :  { %v1648_v39 = vsel %vm860_vm0, %v1536_v32, %v1647_v35 }
 0x144   :  { %v1650_v40 = vadd.f32 %v1648_v39, %v1643_v37 }
 0x145   :  { %v1550_v41 = vpop.f32.mrf.mxu2 }
 0x146   :  { %v2483_v42 = vmul.f32 -1.442695, %v1650_v40  ;;  %v1563_v43 = vpop.f32.mrf.mxu3 }
 0x148   :  { %2688 = vpow2.f32 %v2483_v42 }
 0x14e   :  { %v2689_v45 = vpop.eup %2688 }
 0x14f   :  { %v1654_v25 = vadd.f32 1.0, %v2689_v45 }
 0x151   :  { %2690 = vrcp.f32 %v1654_v25  ;;  %v1666_v19 = vand.u32 2147483648, %v1654_v25  ;;  %vm1660_vm11 = vweird.f32 %v1654_v25  ;;  %v1664_v16 = vand.u32 2147483647, %v1654_v25 }
 0x153   :  { %v1667_v20 = vor.u32 1.1754944e-38, %v1666_v19  ;;  %vm1665_vm13 = vcmp.eq.f32.partialorder %v1664_v16, 8.507059e+37 }
 0x155   :  { %v1574_v46 = vpop.f32.mrf.mxu0 }
 0x156   :  { %v1587_v48 = vpop.f32.mrf.mxu1 }
 0x157   :  { %v2691_v49 = vpop.eup %2690  ;;  %v1588_v53 = vadd.f32 %v1587_v48, %v1574_v46 }
 0x158   :  { %v1656_v50 = vmul.f32 %v2691_v49, %v1654_v25  ;;  %vm1661_vm10 = vweird.f32 %v2691_v49 }
 0x159   :  { %v1676_v4 = vadd.f32 %v1672_v55, %v1588_v53  ;;  %vm1662_vm12 = vmor %vm1660_vm11, %vm1661_vm10 }
 0x15a   :  { %v1657_v59 = vsub.f32 1.0, %v1656_v50 }
 0x15c   :  { %v1658_v5 = vmul.f32 %v2691_v49, %v1657_v59 }
 0x15d   :  { %v1600_v57 = vpop.f32.mrf.mxu2  ;;  %v1576_v63 = vpop.f32.mrf.mxu0 }
 0x15e   :  { %v1613_v60 = vpop.f32.mrf.mxu3  ;;  %v1589_v2 = vpop.f32.mrf.mxu1  ;;  %v1659_v12 = vadd.f32 %v2691_v49, %v1658_v5 }
 0x15f   :  { %v1614_v54 = vadd.f32 %v1613_v60, %v1600_v57 }
 0x160   :  { %v1663_v18 = vsel %vm1662_vm12, %v2691_v49, %v1659_v12 }
 0x161   :  { %v1677_v56 = vadd.f32 %v1673_v58, %v1614_v54  ;;  %v1668_v21 = vsel %vm1665_vm13, %v1667_v20, %v1663_v18 }
 0x162   :  { %v1688_v23 = vsub.f32 1.0, %v1668_v21  ;;  %v1690_v26 = vmul.f32 %v1668_v21, %v2920_v0 }
 0x163   :  { %v1680_v8 = vrot.slane %v1677_v56, 7 }
 0x165   :  { %v1681_v10 = vsel %vm860_vm0, %v1676_v4, %v1680_v8  ;;  %v1602_v11 = vpop.f32.mrf.mxu2 }
 0x166   :  { %v1683_v14 = vmul.f32 %v1681_v10, %v1640_v9  ;;  %v1615_v15 = vpop.f32.mrf.mxu3 }
 0x168   :  { %v1686_v17 = vadd.f32 %v1684_v13, %v1683_v14 }
 0x16a   :  { %2692 = vtanh.f32 %v1686_v17 }
 0x170   :  { %v2693_v24 = vpop.eup %2692 }
 0x171   :  { %v1689_v22 = vmul.f32 %v2693_v24, %v1688_v23 }
 0x173   :  { %v1691_v27 = vadd.f32 %v1690_v26, %v1689_v22 }
 0x175   :  { %1694 = vst.msk [vmem:[#allocation12] sm:$0x3] %vm1692_vm14, %v1691_v27 }
 0x176   :  { %1705 = dma.vmem_to_hbm [thread:$0]  %s1701_s21, 32, %s1703_s24, [#allocation5]  }
 0x177   :  { %2844 = dma.done.wait [#allocation5], 32  }
 0x178   :  { %2845 = vsyncadd [#allocation5], 4294967264 }
 0x179   :  { %1710 = vsyncpa [#allocation4], 1 }
 0x17a   :  { %1711 = vsyncpa [#allocation7], 1 }
 0x17b   :  { %1712 = vsyncpa [#allocation10], 1 }
 0x17c   :  { %1713 = vsyncpa [#allocation5], 1 }

</bundles_post_ra>
